<compile_context>
chip_gen: v6e
topology: v6e:2x2x1
jax: 0.10.0
libtpu: 0.0.40
codegen_flags: <defaults>
</compile_context>

<pallas_src>
import numpy as np
import jax
import jax.numpy as jnp
from jax.experimental import pallas as pl
from jax.experimental.pallas import tpu as pltpu

_SQRT_HALF = 0.7071067811865476
_LN_EPS = 1e-5  # torch.nn.LayerNorm default


# ------------------------------ kernel factory -------------------------------

def _make_kernel(*, has_downsample, f_valid, f_pad, approx_gelu):
    """Builds the fused residual-block kernel (static config captured by closure)."""
    inv_f = 1.0 / float(f_valid)
    needs_mask = f_pad != f_valid

    def gelu(h):
        if approx_gelu:
            # tanh approximation runs on the EUP slot (v6e VALU-bound regimes).
            return jax.nn.gelu(h, approximate=True)
        return 0.5 * h * (1.0 + jax.lax.erf(h * _SQRT_HALF))  # exact, torch default

    def layernorm(h, gamma, beta, mask):
        # Padded feature columns are exactly zero by construction, so the raw
        # sum is correct; only the centered values need masking for variance.
        mean = jnp.sum(h, axis=-1, keepdims=True) * inv_f
        c = h - mean
        if mask is not None:
            c = jnp.where(mask, c, 0.0)
        var = jnp.sum(c * c, axis=-1, keepdims=True) * inv_f
        return c * jax.lax.rsqrt(var + _LN_EPS) * gamma + beta

    def kernel(x_ref, w1_ref, b1_ref, g1_ref, be1_ref,
               w2_ref, b2_ref, g2_ref, be2_ref, *rest):
        if has_downsample:
            wd_ref, bd_ref, o_ref = rest
        else:
            (o_ref,) = rest

        mask = None
        if needs_mask:
            mask = jax.lax.broadcasted_iota(jnp.int32, (1, f_pad), 1) < f_valid

        x = x_ref[...]
        mm_dt = w1_ref.dtype                 # bf16 (fast path) or f32 (validation)
        x_mm = x.astype(mm_dt)

        if has_downsample:
            identity = (jnp.dot(x_mm, wd_ref[...],
                                preferred_element_type=jnp.float32) + bd_ref[...])
        else:
            identity = x.astype(jnp.float32)

        h = jnp.dot(x_mm, w1_ref[...], preferred_element_type=jnp.float32) + b1_ref[...]
        h = layernorm(h, g1_ref[...], be1_ref[...], mask)
        h = gelu(h)
        # TODO(synk): training-mode dropout masking omitted (eval mode == identity).
        h = jnp.dot(h.astype(mm_dt), w2_ref[...],
                    preferred_element_type=jnp.float32) + b2_ref[...]
        h = layernorm(h, g2_ref[...], be2_ref[...], mask)
        out = gelu(h + identity)
        o_ref[...] = out.astype(o_ref.dtype)

    return kernel


# --------------------------------- wrapper ------------------------------------

def _vmem_capacity_bytes():
    try:
        return int(pltpu.get_tpu_info().vmem_capacity_bytes)
    except Exception:
        return 64 * 1024 * 1024   # conservative (v7x per-TC figure)


def residual_block_forward(x, params, *, use_bf16_matmul=True, approx_gelu=False,
                           max_block_rows=None):
    """x: (..., in_features) -> (..., out_features). Matches ResidualBlock.eval()."""
    orig_dtype = x.dtype
    f_in = x.shape[-1]
    f_out = params["w1"].shape[1]
    lead_shape = x.shape[:-1]
    has_ds = "wd" in params
    if not has_ds:
        assert f_in == f_out, "identity skip requires in_features == out_features"

    # Lane-dense output features: pad to a multiple of 128 (unmasked vst, full MXU width).
    f_pad = f_out if f_out % 128 == 0 else ((f_out + 127) // 128) * 128
    mm_dtype = jnp.bfloat16 if use_bf16_matmul else jnp.float32

    def pad2d(a, r, c):
        pr, pc = r - a.shape[0], c - a.shape[1]
        return a if (pr == 0 and pc == 0) else jnp.pad(a, ((0, pr), (0, pc)))

    x2d = x.reshape(-1, f_in)
    f_in_eff = f_in
    if not has_ds and f_pad != f_out:
        # Identity skip with lane padding: pad x once so the residual add lines up.
        x2d = pad2d(x2d, x2d.shape[0], f_pad)
        f_in_eff = f_pad
    rows = x2d.shape[0]

    # One-time weight prep: zero-pad to lane-dense width, bf16 for MXU operands,
    # f32 for biases / LayerNorm params (added / applied in f32).
    w1 = pad2d(params["w1"], f_in_eff, f_pad).astype(mm_dtype)
    b1 = pad2d(params["b1"], 1, f_pad).astype(jnp.float32)
    g1 = pad2d(params["g1"], 1, f_pad).astype(jnp.float32)
    be1 = pad2d(params["be1"], 1, f_pad).astype(jnp.float32)
    w2 = pad2d(params["w2"], f_pad, f_pad).astype(mm_dtype)
    b2 = pad2d(params["b2"], 1, f_pad).astype(jnp.float32)
    g2 = pad2d(params["g2"], 1, f_pad).astype(jnp.float32)
    be2 = pad2d(params["be2"], 1, f_pad).astype(jnp.float32)
    weight_args = [w1, b1, g1, be1, w2, b2, g2, be2]
    if has_ds:
        wd = pad2d(params["wd"], f_in_eff, f_pad).astype(mm_dtype)
        bd = pad2d(params["bd"], 1, f_pad).astype(jnp.float32)
        weight_args += [wd, bd]

    # ---- generation-aware tile / VMEM sizing --------------------------------
    vmem_cap = _vmem_capacity_bytes()                       # 128 MiB (v5e/v6e) / 64 MiB (v7x)
    vmem_limit = min(int(vmem_cap * 0.80), vmem_cap - (8 << 20))
    weight_bytes = sum(int(a.size) * a.dtype.itemsize for a in weight_args)

    itemsize = jnp.dtype(orig_dtype).itemsize
    bytes_per_row = 2 * (f_in_eff + f_pad) * itemsize       # double-buffered x / out tiles
    bytes_per_row += 6 * f_pad * 4                          # f32 intermediates headroom
    budget = vmem_limit - 2 * weight_bytes - (4 << 20)
    tm_cap = 2048 if vmem_cap >= (96 << 20) else 512        # big tiles on 128 MiB chips
    if max_block_rows is not None:
        tm_cap = min(tm_cap, max_block_rows)
    tm = max(8, min(budget // bytes_per_row, tm_cap))

    if rows <= 8:
        tm = rows                                           # single full block
    else:
        tm = min(tm, rows)
        if rows >= 16:
            tm = min(tm, rows // 2)                         # >=2 blocks for v7x megacore
        tm = (tm // 128) * 128 if tm >= 128 else max(8, (tm // 8) * 8)
    n_blocks = pl.cdiv(rows, tm)                            # ragged last block is masked

    # ---- cost estimate (scheduling hint only) --------------------------------
    flops = 2 * rows * (f_in_eff * f_pad + f_pad * f_pad)
    if has_ds:
        flops += 2 * rows * f_in_eff * f_pad
    cost = pl.CostEstimate(
        flops=int(flops),
        transcendentals=int(4 * rows * f_pad),              # 2x GELU + 2x rsqrt per element
        bytes_accessed=int(rows * (f_in_eff + f_pad) * itemsize + weight_bytes),
    )

    kernel = _make_kernel(has_downsample=has_ds, f_valid=f_out, f_pad=f_pad,
                          approx_gelu=approx_gelu)

    def _call(single_buffer_weights):
        def resident_spec(a):
            # Constant index_map -> block stays VMEM-resident across grid steps.
            kw = {"pipeline_mode": pl.Buffered(1)} if single_buffer_weights else {}
            return pl.BlockSpec(a.shape, lambda i: (0, 0), **kw)

        in_specs = [pl.BlockSpec((tm, f_in_eff), lambda i: (i, 0))]
        in_specs += [resident_spec(a) for a in weight_args]

        fn = pl.pallas_call(
            kernel,
            out_shape=jax.ShapeDtypeStruct((rows, f_pad), orig_dtype),
            grid_spec=pltpu.PrefetchScalarGridSpec(
                num_scalar_prefetch=0,
                grid=(n_blocks,),
                in_specs=in_specs,
                out_specs=pl.BlockSpec((tm, f_pad), lambda i: (i, 0)),
            ),
            compiler_params=pltpu.CompilerParams(
                dimension_semantics=("parallel",),          # shard row blocks over TCs
                vmem_limit_bytes=int(vmem_limit),
            ),
            cost_estimate=cost,
        )
        return jax.block_until_ready(fn(x2d, *weight_args))

    try:
        out2d = _call(True)
    except Exception:
        # Fallback if single-buffered resident weights are rejected by this build.
        out2d = _call(False)

    if f_pad != f_out:
        out2d = out2d[:, :f_out]
    return out2d.reshape(lead_shape + (f_out,))


# --------------------------- params & pure-JAX reference ----------------------

def init_residual_block_params(key, in_features, out_features, dtype=jnp.float32):
    """Weights in (in, out) layout so the kernel computes x @ W + b (== nn.Linear)."""
    ks = jax.random.split(key, 3)

    def linear_init(k, fin, fout):
        bound = 1.0 / np.sqrt(fin)
        kw, kb = jax.random.split(k)
        w = jax.random.uniform(kw, (fin, fout), dtype, -bound, bound)
        b = jax.random.uniform(kb, (1, fout), dtype, -bound, bound)
        return w, b

    w1, b1 = linear_init(ks[0], in_features, out_features)
    w2, b2 = linear_init(ks[1], out_features, out_features)
    params = dict(
        w1=w1, b1=b1,
        g1=jnp.ones((1, out_features), dtype), be1=jnp.zeros((1, out_features), dtype),
        w2=w2, b2=b2,
        g2=jnp.ones((1, out_features), dtype), be2=jnp.zeros((1, out_features), dtype),
    )
    if in_features != out_features:
        wd, bd = linear_init(ks[2], in_features, out_features)
        params.update(wd=wd, bd=bd)
    return params


def _ref_gelu(h):
    return 0.5 * h * (1.0 + jax.lax.erf(h * _SQRT_HALF))


def _ref_layernorm(h, gamma, beta):
    mean = jnp.mean(h, axis=-1, keepdims=True)
    c = h - mean
    var = jnp.mean(c * c, axis=-1, keepdims=True)
    return c * jax.lax.rsqrt(var + _LN_EPS) * gamma + beta


def residual_block_reference(x, params):
    """Pure-JAX f32 reference, same math as the PyTorch module in eval mode."""
    out = x @ params["w1"] + params["b1"]
    out = _ref_layernorm(out, params["g1"], params["be1"])
    out = _ref_gelu(out)
    out = out @ params["w2"] + params["b2"]
    out = _ref_layernorm(out, params["g2"], params["be2"])
    identity = (x @ params["wd"] + params["bd"]) if "wd" in params else x
    return _ref_gelu(out + identity)


# ------------------------------------- main -----------------------------------

if __name__ == "__main__":
    key = jax.random.PRNGKey(0)
    kx, kp, kx2, kp2 = jax.random.split(key, 4)

    # Downsample path (in != out), f_out < 128 exercises the lane-padding path.
    B, S, F_IN, F_OUT = 2, 8, 32, 64
    x = jax.random.normal(kx, (B, S, F_IN), dtype=jnp.float32)
    params = init_residual_block_params(kp, F_IN, F_OUT)
    ref = residual_block_reference(x, params)

    # 1) f32-MXU validation path: tight tolerance against the module math.
    out_f32 = jax.block_until_ready(
        residual_block_forward(x, params, use_bf16_matmul=False))
    np.testing.assert_allclose(np.asarray(out_f32), np.asarray(ref),
                               rtol=1e-4, atol=1e-4)

    # 2) Default bf16-MXU fast path: relaxed tolerance for bf16 operand rounding.
    out_bf16 = jax.block_until_ready(residual_block_forward(x, params))
    np.testing.assert_allclose(np.asarray(out_bf16), np.asarray(ref),
                               rtol=5e-2, atol=5e-2)

    # 3) Identity-skip path (in == out).
    x2 = jax.random.normal(kx2, (B, S, F_OUT), dtype=jnp.float32)
    params2 = init_residual_block_params(kp2, F_OUT, F_OUT)
    ref2 = residual_block_reference(x2, params2)
    out2 = jax.block_until_ready(residual_block_forward(x2, params2))
    np.testing.assert_allclose(np.asarray(out2), np.asarray(ref2),
                               rtol=5e-2, atol=5e-2)

    print("KERNEL_OK")
</pallas_src>

<mosaic_0001>
module attributes {stable_mosaic.version = 11 : i64} {
  func.func @kernel(%arg0: i32, %arg1: memref<8x32xf32, #tpu.memory_space<vmem>>, %arg2: memref<32x128xf32, #tpu.memory_space<vmem>>, %arg3: memref<1x128xf32, #tpu.memory_space<vmem>>, %arg4: memref<1x128xf32, #tpu.memory_space<vmem>>, %arg5: memref<1x128xf32, #tpu.memory_space<vmem>>, %arg6: memref<128x128xf32, #tpu.memory_space<vmem>>, %arg7: memref<1x128xf32, #tpu.memory_space<vmem>>, %arg8: memref<1x128xf32, #tpu.memory_space<vmem>>, %arg9: memref<1x128xf32, #tpu.memory_space<vmem>>, %arg10: memref<32x128xf32, #tpu.memory_space<vmem>>, %arg11: memref<1x128xf32, #tpu.memory_space<vmem>>, %arg12: memref<8x128xf32, #tpu.memory_space<vmem>>) attributes {dimension_semantics = [#tpu.dimension_semantics<parallel>], iteration_bounds = array<i64: 2>, scalar_prefetch = 0 : i64, scratch_operands = 0 : i64, tpu.core_type = #tpu.core_type<tc>, window_params = [{transform_indices = @transform_0, window_bounds = array<i64: 8, 32>}, {pipeline_mode = #tpu.pipeline_mode<synchronous>, transform_indices = @transform_1, window_bounds = array<i64: 32, 128>}, {pipeline_mode = #tpu.pipeline_mode<synchronous>, transform_indices = @transform_2, window_bounds = array<i64: 1, 128>}, {pipeline_mode = #tpu.pipeline_mode<synchronous>, transform_indices = @transform_3, window_bounds = array<i64: 1, 128>}, {pipeline_mode = #tpu.pipeline_mode<synchronous>, transform_indices = @transform_4, window_bounds = array<i64: 1, 128>}, {pipeline_mode = #tpu.pipeline_mode<synchronous>, transform_indices = @transform_5, window_bounds = array<i64: 128, 128>}, {pipeline_mode = #tpu.pipeline_mode<synchronous>, transform_indices = @transform_6, window_bounds = array<i64: 1, 128>}, {pipeline_mode = #tpu.pipeline_mode<synchronous>, transform_indices = @transform_7, window_bounds = array<i64: 1, 128>}, {pipeline_mode = #tpu.pipeline_mode<synchronous>, transform_indices = @transform_8, window_bounds = array<i64: 1, 128>}, {pipeline_mode = #tpu.pipeline_mode<synchronous>, transform_indices = @transform_9, window_bounds = array<i64: 32, 128>}, {pipeline_mode = #tpu.pipeline_mode<synchronous>, transform_indices = @transform_10, window_bounds = array<i64: 1, 128>}, {transform_indices = @transform_11, window_bounds = array<i64: 8, 128>}]} {
    %0 = tpu.iota {dimensions = array<i32: 1>} : vector<1x128xi32>
    %c64_i32 = arith.constant 64 : i32
    %1 = vector.broadcast %c64_i32 : i32 to vector<1x128xi32>
    %2 = arith.cmpi slt, %0, %1 : vector<1x128xi32>
    %c0 = arith.constant 0 : index
    %c0_0 = arith.constant 0 : index
    %3 = vector.load %arg1[%c0, %c0_0] : memref<8x32xf32, #tpu.memory_space<vmem>>, vector<8x32xf32>
    %c0_1 = arith.constant 0 : index
    %c0_2 = arith.constant 0 : index
    %4 = vector.load %arg10[%c0_1, %c0_2] : memref<32x128xf32, #tpu.memory_space<vmem>>, vector<32x128xf32>
    %cst = arith.constant dense<0.000000e+00> : vector<8x128xf32>
    %5 = tpu.matmul %3, %4, %cst {dimension_numbers = #tpu.dot_dimension_numbers<[1], [0], [0], [1], [0, 0, 1, 1], [], []>} : vector<8x32xf32>, vector<32x128xf32>, vector<8x128xf32> -> vector<8x128xf32>
    %c0_3 = arith.constant 0 : index
    %c0_4 = arith.constant 0 : index
    %6 = vector.load %arg11[%c0_3, %c0_4] : memref<1x128xf32, #tpu.memory_space<vmem>>, vector<1x128xf32>
    %7 = vector.broadcast %6 : vector<1x128xf32> to vector<8x128xf32>
    %8 = arith.addf %5, %7 : vector<8x128xf32>
    %c0_5 = arith.constant 0 : index
    %c0_6 = arith.constant 0 : index
    %9 = vector.load %arg2[%c0_5, %c0_6] : memref<32x128xf32, #tpu.memory_space<vmem>>, vector<32x128xf32>
    %cst_7 = arith.constant dense<0.000000e+00> : vector<8x128xf32>
    %10 = tpu.matmul %3, %9, %cst_7 {dimension_numbers = #tpu.dot_dimension_numbers<[1], [0], [0], [1], [0, 0, 1, 1], [], []>} : vector<8x32xf32>, vector<32x128xf32>, vector<8x128xf32> -> vector<8x128xf32>
    %c0_8 = arith.constant 0 : index
    %c0_9 = arith.constant 0 : index
    %11 = vector.load %arg3[%c0_8, %c0_9] : memref<1x128xf32, #tpu.memory_space<vmem>>, vector<1x128xf32>
    %12 = vector.broadcast %11 : vector<1x128xf32> to vector<8x128xf32>
    %13 = arith.addf %10, %12 : vector<8x128xf32>
    %c0_10 = arith.constant 0 : index
    %c0_11 = arith.constant 0 : index
    %14 = vector.load %arg4[%c0_10, %c0_11] : memref<1x128xf32, #tpu.memory_space<vmem>>, vector<1x128xf32>
    %c0_12 = arith.constant 0 : index
    %c0_13 = arith.constant 0 : index
    %15 = vector.load %arg5[%c0_12, %c0_13] : memref<1x128xf32, #tpu.memory_space<vmem>>, vector<1x128xf32>
    %cst_14 = arith.constant dense<0.000000e+00> : vector<8xf32>
    %16 = vector.multi_reduction <add>, %13, %cst_14 [1] : vector<8x128xf32> to vector<8xf32>
    %17 = vector.shape_cast %16 : vector<8xf32> to vector<8x1xf32>
    %cst_15 = arith.constant 1.562500e-02 : f32
    %18 = vector.broadcast %cst_15 : f32 to vector<8x1xf32>
    %19 = arith.mulf %17, %18 : vector<8x1xf32>
    %20 = vector.broadcast %19 : vector<8x1xf32> to vector<8x128xf32>
    %21 = arith.subf %13, %20 : vector<8x128xf32>
    %cst_16 = arith.constant 0.000000e+00 : f32
    %22 = vector.shape_cast %2 : vector<1x128xi1> to vector<1x128xi1>
    %23 = vector.broadcast %22 : vector<1x128xi1> to vector<8x128xi1>
    %24 = vector.broadcast %cst_16 : f32 to vector<8x128xf32>
    %25 = arith.select %23, %21, %24 : vector<8x128xi1>, vector<8x128xf32>
    %26 = arith.mulf %25, %25 : vector<8x128xf32>
    %cst_17 = arith.constant dense<0.000000e+00> : vector<8xf32>
    %27 = vector.multi_reduction <add>, %26, %cst_17 [1] : vector<8x128xf32> to vector<8xf32>
    %28 = vector.shape_cast %27 : vector<8xf32> to vector<8x1xf32>
    %cst_18 = arith.constant 1.562500e-02 : f32
    %29 = vector.broadcast %cst_18 : f32 to vector<8x1xf32>
    %30 = arith.mulf %28, %29 : vector<8x1xf32>
    %cst_19 = arith.constant 9.99999974E-6 : f32
    %31 = vector.broadcast %cst_19 : f32 to vector<8x1xf32>
    %32 = arith.addf %30, %31 : vector<8x1xf32>
    %33 = math.rsqrt %32 : vector<8x1xf32>
    %34 = vector.broadcast %33 : vector<8x1xf32> to vector<8x128xf32>
    %35 = arith.mulf %25, %34 : vector<8x128xf32>
    %36 = vector.broadcast %14 : vector<1x128xf32> to vector<8x128xf32>
    %37 = arith.mulf %35, %36 : vector<8x128xf32>
    %38 = vector.broadcast %15 : vector<1x128xf32> to vector<8x128xf32>
    %39 = arith.addf %37, %38 : vector<8x128xf32>
    %cst_20 = arith.constant 5.000000e-01 : f32
    %40 = vector.broadcast %cst_20 : f32 to vector<8x128xf32>
    %41 = arith.mulf %40, %39 : vector<8x128xf32>
    %cst_21 = arith.constant 0.707106769 : f32
    %42 = vector.broadcast %cst_21 : f32 to vector<8x128xf32>
    %43 = arith.mulf %39, %42 : vector<8x128xf32>
    %44 = math.erf %43 : vector<8x128xf32>
    %cst_22 = arith.constant 1.000000e+00 : f32
    %45 = vector.broadcast %cst_22 : f32 to vector<8x128xf32>
    %46 = arith.addf %45, %44 : vector<8x128xf32>
    %47 = arith.mulf %41, %46 : vector<8x128xf32>
    %c0_23 = arith.constant 0 : index
    %c0_24 = arith.constant 0 : index
    %48 = vector.load %arg6[%c0_23, %c0_24] : memref<128x128xf32, #tpu.memory_space<vmem>>, vector<128x128xf32>
    %cst_25 = arith.constant dense<0.000000e+00> : vector<8x128xf32>
    %49 = tpu.matmul %47, %48, %cst_25 {dimension_numbers = #tpu.dot_dimension_numbers<[1], [0], [0], [1], [0, 0, 1, 1], [], []>} : vector<8x128xf32>, vector<128x128xf32>, vector<8x128xf32> -> vector<8x128xf32>
    %c0_26 = arith.constant 0 : index
    %c0_27 = arith.constant 0 : index
    %50 = vector.load %arg7[%c0_26, %c0_27] : memref<1x128xf32, #tpu.memory_space<vmem>>, vector<1x128xf32>
    %51 = vector.broadcast %50 : vector<1x128xf32> to vector<8x128xf32>
    %52 = arith.addf %49, %51 : vector<8x128xf32>
    %c0_28 = arith.constant 0 : index
    %c0_29 = arith.constant 0 : index
    %53 = vector.load %arg8[%c0_28, %c0_29] : memref<1x128xf32, #tpu.memory_space<vmem>>, vector<1x128xf32>
    %c0_30 = arith.constant 0 : index
    %c0_31 = arith.constant 0 : index
    %54 = vector.load %arg9[%c0_30, %c0_31] : memref<1x128xf32, #tpu.memory_space<vmem>>, vector<1x128xf32>
    %cst_32 = arith.constant dense<0.000000e+00> : vector<8xf32>
    %55 = vector.multi_reduction <add>, %52, %cst_32 [1] : vector<8x128xf32> to vector<8xf32>
    %56 = vector.shape_cast %55 : vector<8xf32> to vector<8x1xf32>
    %cst_33 = arith.constant 1.562500e-02 : f32
    %57 = vector.broadcast %cst_33 : f32 to vector<8x1xf32>
    %58 = arith.mulf %56, %57 : vector<8x1xf32>
    %59 = vector.broadcast %58 : vector<8x1xf32> to vector<8x128xf32>
    %60 = arith.subf %52, %59 : vector<8x128xf32>
    %cst_34 = arith.constant 0.000000e+00 : f32
    %61 = vector.shape_cast %2 : vector<1x128xi1> to vector<1x128xi1>
    %62 = vector.broadcast %61 : vector<1x128xi1> to vector<8x128xi1>
    %63 = vector.broadcast %cst_34 : f32 to vector<8x128xf32>
    %64 = arith.select %62, %60, %63 : vector<8x128xi1>, vector<8x128xf32>
    %65 = arith.mulf %64, %64 : vector<8x128xf32>
    %cst_35 = arith.constant dense<0.000000e+00> : vector<8xf32>
    %66 = vector.multi_reduction <add>, %65, %cst_35 [1] : vector<8x128xf32> to vector<8xf32>
    %67 = vector.shape_cast %66 : vector<8xf32> to vector<8x1xf32>
    %cst_36 = arith.constant 1.562500e-02 : f32
    %68 = vector.broadcast %cst_36 : f32 to vector<8x1xf32>
    %69 = arith.mulf %67, %68 : vector<8x1xf32>
    %cst_37 = arith.constant 9.99999974E-6 : f32
    %70 = vector.broadcast %cst_37 : f32 to vector<8x1xf32>
    %71 = arith.addf %69, %70 : vector<8x1xf32>
    %72 = math.rsqrt %71 : vector<8x1xf32>
    %73 = vector.broadcast %72 : vector<8x1xf32> to vector<8x128xf32>
    %74 = arith.mulf %64, %73 : vector<8x128xf32>
    %75 = vector.broadcast %53 : vector<1x128xf32> to vector<8x128xf32>
    %76 = arith.mulf %74, %75 : vector<8x128xf32>
    %77 = vector.broadcast %54 : vector<1x128xf32> to vector<8x128xf32>
    %78 = arith.addf %76, %77 : vector<8x128xf32>
    %79 = arith.addf %78, %8 : vector<8x128xf32>
    %cst_38 = arith.constant 5.000000e-01 : f32
    %80 = vector.broadcast %cst_38 : f32 to vector<8x128xf32>
    %81 = arith.mulf %80, %79 : vector<8x128xf32>
    %cst_39 = arith.constant 0.707106769 : f32
    %82 = vector.broadcast %cst_39 : f32 to vector<8x128xf32>
    %83 = arith.mulf %79, %82 : vector<8x128xf32>
    %84 = math.erf %83 : vector<8x128xf32>
    %cst_40 = arith.constant 1.000000e+00 : f32
    %85 = vector.broadcast %cst_40 : f32 to vector<8x128xf32>
    %86 = arith.addf %85, %84 : vector<8x128xf32>
    %87 = arith.mulf %81, %86 : vector<8x128xf32>
    %c0_41 = arith.constant 0 : index
    %c0_42 = arith.constant 0 : index
    %88 = vector.load %arg12[%c0_41, %c0_42] : memref<8x128xf32, #tpu.memory_space<vmem>>, vector<8x128xf32>
    tpu.vector_store %arg12[%c0_41, %c0_42], %87 {strides = array<i32>} : memref<8x128xf32, #tpu.memory_space<vmem>>, vector<8x128xf32>,
    return
  }
  func.func @transform_0(%arg0: i32) -> (i32, i32) {
    %c0_i32 = arith.constant 0 : i32
    %c0_i32_0 = arith.constant 0 : i32
    return %arg0, %c0_i32 : i32, i32
  }
  func.func @transform_1(%arg0: i32) -> (i32, i32) {
    %c0_i32 = arith.constant 0 : i32
    %c0_i32_0 = arith.constant 0 : i32
    %c0_i32_1 = arith.constant 0 : i32
    return %c0_i32, %c0_i32_0 : i32, i32
  }
  func.func @transform_2(%arg0: i32) -> (i32, i32) {
    %c0_i32 = arith.constant 0 : i32
    %c0_i32_0 = arith.constant 0 : i32
    %c0_i32_1 = arith.constant 0 : i32
    return %c0_i32, %c0_i32_0 : i32, i32
  }
  func.func @transform_3(%arg0: i32) -> (i32, i32) {
    %c0_i32 = arith.constant 0 : i32
    %c0_i32_0 = arith.constant 0 : i32
    %c0_i32_1 = arith.constant 0 : i32
    return %c0_i32, %c0_i32_0 : i32, i32
  }
  func.func @transform_4(%arg0: i32) -> (i32, i32) {
    %c0_i32 = arith.constant 0 : i32
    %c0_i32_0 = arith.constant 0 : i32
    %c0_i32_1 = arith.constant 0 : i32
    return %c0_i32, %c0_i32_0 : i32, i32
  }
  func.func @transform_5(%arg0: i32) -> (i32, i32) {
    %c0_i32 = arith.constant 0 : i32
    %c0_i32_0 = arith.constant 0 : i32
    %c0_i32_1 = arith.constant 0 : i32
    return %c0_i32, %c0_i32_0 : i32, i32
  }
  func.func @transform_6(%arg0: i32) -> (i32, i32) {
    %c0_i32 = arith.constant 0 : i32
    %c0_i32_0 = arith.constant 0 : i32
    %c0_i32_1 = arith.constant 0 : i32
    return %c0_i32, %c0_i32_0 : i32, i32
  }
  func.func @transform_7(%arg0: i32) -> (i32, i32) {
    %c0_i32 = arith.constant 0 : i32
    %c0_i32_0 = arith.constant 0 : i32
    %c0_i32_1 = arith.constant 0 : i32
    return %c0_i32, %c0_i32_0 : i32, i32
  }
  func.func @transform_8(%arg0: i32) -> (i32, i32) {
    %c0_i32 = arith.constant 0 : i32
    %c0_i32_0 = arith.constant 0 : i32
    %c0_i32_1 = arith.constant 0 : i32
    return %c0_i32, %c0_i32_0 : i32, i32
  }
  func.func @transform_9(%arg0: i32) -> (i32, i32) {
    %c0_i32 = arith.constant 0 : i32
    %c0_i32_0 = arith.constant 0 : i32
    %c0_i32_1 = arith.constant 0 : i32
    return %c0_i32, %c0_i32_0 : i32, i32
  }
  func.func @transform_10(%arg0: i32) -> (i32, i32) {
    %c0_i32 = arith.constant 0 : i32
    %c0_i32_0 = arith.constant 0 : i32
    %c0_i32_1 = arith.constant 0 : i32
    return %c0_i32, %c0_i32_0 : i32, i32
  }
  func.func @transform_11(%arg0: i32) -> (i32, i32) {
    %c0_i32 = arith.constant 0 : i32
    %c0_i32_0 = arith.constant 0 : i32
    return %arg0, %c0_i32 : i32, i32
  }
}

module attributes {stable_mosaic.version = 11 : i64} {
  func.func @kernel(%arg0: i32, %arg1: memref<8x32xf32, #tpu.memory_space<vmem>>, %arg2: memref<32x128xf32, #tpu.memory_space<vmem>>, %arg3: memref<1x128xf32, #tpu.memory_space<vmem>>, %arg4: memref<1x128xf32, #tpu.memory_space<vmem>>, %arg5: memref<1x128xf32, #tpu.memory_space<vmem>>, %arg6: memref<128x128xf32, #tpu.memory_space<vmem>>, %arg7: memref<1x128xf32, #tpu.memory_space<vmem>>, %arg8: memref<1x128xf32, #tpu.memory_space<vmem>>, %arg9: memref<1x128xf32, #tpu.memory_space<vmem>>, %arg10: memref<32x128xf32, #tpu.memory_space<vmem>>, %arg11: memref<1x128xf32, #tpu.memory_space<vmem>>, %arg12: memref<8x128xf32, #tpu.memory_space<vmem>>) attributes {dimension_semantics = [#tpu.dimension_semantics<parallel>], iteration_bounds = array<i64: 2>, scalar_prefetch = 0 : i64, scratch_operands = 0 : i64, tpu.core_type = #tpu.core_type<tc>, window_params = [{transform_indices = @transform_0, window_bounds = array<i64: 8, 32>}, {pipeline_mode = #tpu.pipeline_mode<synchronous>, transform_indices = @transform_1, window_bounds = array<i64: 32, 128>}, {pipeline_mode = #tpu.pipeline_mode<synchronous>, transform_indices = @transform_2, window_bounds = array<i64: 1, 128>}, {pipeline_mode = #tpu.pipeline_mode<synchronous>, transform_indices = @transform_3, window_bounds = array<i64: 1, 128>}, {pipeline_mode = #tpu.pipeline_mode<synchronous>, transform_indices = @transform_4, window_bounds = array<i64: 1, 128>}, {pipeline_mode = #tpu.pipeline_mode<synchronous>, transform_indices = @transform_5, window_bounds = array<i64: 128, 128>}, {pipeline_mode = #tpu.pipeline_mode<synchronous>, transform_indices = @transform_6, window_bounds = array<i64: 1, 128>}, {pipeline_mode = #tpu.pipeline_mode<synchronous>, transform_indices = @transform_7, window_bounds = array<i64: 1, 128>}, {pipeline_mode = #tpu.pipeline_mode<synchronous>, transform_indices = @transform_8, window_bounds = array<i64: 1, 128>}, {pipeline_mode = #tpu.pipeline_mode<synchronous>, transform_indices = @transform_9, window_bounds = array<i64: 32, 128>}, {pipeline_mode = #tpu.pipeline_mode<synchronous>, transform_indices = @transform_10, window_bounds = array<i64: 1, 128>}, {transform_indices = @transform_11, window_bounds = array<i64: 8, 128>}]} {
    %0 = tpu.iota {dimensions = array<i32: 1>} : vector<1x128xi32>
    %c64_i32 = arith.constant 64 : i32
    %1 = vector.broadcast %c64_i32 : i32 to vector<1x128xi32>
    %2 = arith.cmpi slt, %0, %1 : vector<1x128xi32>
    %c0 = arith.constant 0 : index
    %c0_0 = arith.constant 0 : index
    %3 = vector.load %arg1[%c0, %c0_0] : memref<8x32xf32, #tpu.memory_space<vmem>>, vector<8x32xf32>
    %c0_1 = arith.constant 0 : index
    %c0_2 = arith.constant 0 : index
    %4 = vector.load %arg10[%c0_1, %c0_2] : memref<32x128xf32, #tpu.memory_space<vmem>>, vector<32x128xf32>
    %cst = arith.constant dense<0.000000e+00> : vector<8x128xf32>
    %5 = tpu.matmul %3, %4, %cst {dimension_numbers = #tpu.dot_dimension_numbers<[1], [0], [0], [1], [0, 0, 1, 1], [], []>} : vector<8x32xf32>, vector<32x128xf32>, vector<8x128xf32> -> vector<8x128xf32>
    %c0_3 = arith.constant 0 : index
    %c0_4 = arith.constant 0 : index
    %6 = vector.load %arg11[%c0_3, %c0_4] : memref<1x128xf32, #tpu.memory_space<vmem>>, vector<1x128xf32>
    %7 = vector.broadcast %6 : vector<1x128xf32> to vector<8x128xf32>
    %8 = arith.addf %5, %7 : vector<8x128xf32>
    %c0_5 = arith.constant 0 : index
    %c0_6 = arith.constant 0 : index
    %9 = vector.load %arg2[%c0_5, %c0_6] : memref<32x128xf32, #tpu.memory_space<vmem>>, vector<32x128xf32>
    %cst_7 = arith.constant dense<0.000000e+00> : vector<8x128xf32>
    %10 = tpu.matmul %3, %9, %cst_7 {dimension_numbers = #tpu.dot_dimension_numbers<[1], [0], [0], [1], [0, 0, 1, 1], [], []>} : vector<8x32xf32>, vector<32x128xf32>, vector<8x128xf32> -> vector<8x128xf32>
    %c0_8 = arith.constant 0 : index
    %c0_9 = arith.constant 0 : index
    %11 = vector.load %arg3[%c0_8, %c0_9] : memref<1x128xf32, #tpu.memory_space<vmem>>, vector<1x128xf32>
    %12 = vector.broadcast %11 : vector<1x128xf32> to vector<8x128xf32>
    %13 = arith.addf %10, %12 : vector<8x128xf32>
    %c0_10 = arith.constant 0 : index
    %c0_11 = arith.constant 0 : index
    %14 = vector.load %arg4[%c0_10, %c0_11] : memref<1x128xf32, #tpu.memory_space<vmem>>, vector<1x128xf32>
    %c0_12 = arith.constant 0 : index
    %c0_13 = arith.constant 0 : index
    %15 = vector.load %arg5[%c0_12, %c0_13] : memref<1x128xf32, #tpu.memory_space<vmem>>, vector<1x128xf32>
    %cst_14 = arith.constant dense<0.000000e+00> : vector<8xf32>
    %16 = vector.multi_reduction <add>, %13, %cst_14 [1] : vector<8x128xf32> to vector<8xf32>
    %17 = vector.shape_cast %16 : vector<8xf32> to vector<8x1xf32>
    %cst_15 = arith.constant 1.562500e-02 : f32
    %18 = vector.broadcast %cst_15 : f32 to vector<8x1xf32>
    %19 = arith.mulf %17, %18 : vector<8x1xf32>
    %20 = vector.broadcast %19 : vector<8x1xf32> to vector<8x128xf32>
    %21 = arith.subf %13, %20 : vector<8x128xf32>
    %cst_16 = arith.constant 0.000000e+00 : f32
    %22 = vector.shape_cast %2 : vector<1x128xi1> to vector<1x128xi1>
    %23 = vector.broadcast %22 : vector<1x128xi1> to vector<8x128xi1>
    %24 = vector.broadcast %cst_16 : f32 to vector<8x128xf32>
    %25 = arith.select %23, %21, %24 : vector<8x128xi1>, vector<8x128xf32>
    %26 = arith.mulf %25, %25 : vector<8x128xf32>
    %cst_17 = arith.constant dense<0.000000e+00> : vector<8xf32>
    %27 = vector.multi_reduction <add>, %26, %cst_17 [1] : vector<8x128xf32> to vector<8xf32>
    %28 = vector.shape_cast %27 : vector<8xf32> to vector<8x1xf32>
    %cst_18 = arith.constant 1.562500e-02 : f32
    %29 = vector.broadcast %cst_18 : f32 to vector<8x1xf32>
    %30 = arith.mulf %28, %29 : vector<8x1xf32>
    %cst_19 = arith.constant 9.99999974E-6 : f32
    %31 = vector.broadcast %cst_19 : f32 to vector<8x1xf32>
    %32 = arith.addf %30, %31 : vector<8x1xf32>
    %33 = math.rsqrt %32 : vector<8x1xf32>
    %34 = vector.broadcast %33 : vector<8x1xf32> to vector<8x128xf32>
    %35 = arith.mulf %25, %34 : vector<8x128xf32>
    %36 = vector.broadcast %14 : vector<1x128xf32> to vector<8x128xf32>
    %37 = arith.mulf %35, %36 : vector<8x128xf32>
    %38 = vector.broadcast %15 : vector<1x128xf32> to vector<8x128xf32>
    %39 = arith.addf %37, %38 : vector<8x128xf32>
    %cst_20 = arith.constant 5.000000e-01 : f32
    %40 = vector.broadcast %cst_20 : f32 to vector<8x128xf32>
    %41 = arith.mulf %40, %39 : vector<8x128xf32>
    %cst_21 = arith.constant 0.707106769 : f32
    %42 = vector.broadcast %cst_21 : f32 to vector<8x128xf32>
    %43 = arith.mulf %39, %42 : vector<8x128xf32>
    %44 = math.erf %43 : vector<8x128xf32>
    %cst_22 = arith.constant 1.000000e+00 : f32
    %45 = vector.broadcast %cst_22 : f32 to vector<8x128xf32>
    %46 = arith.addf %45, %44 : vector<8x128xf32>
    %47 = arith.mulf %41, %46 : vector<8x128xf32>
    %c0_23 = arith.constant 0 : index
    %c0_24 = arith.constant 0 : index
    %48 = vector.load %arg6[%c0_23, %c0_24] : memref<128x128xf32, #tpu.memory_space<vmem>>, vector<128x128xf32>
    %cst_25 = arith.constant dense<0.000000e+00> : vector<8x128xf32>
    %49 = tpu.matmul %47, %48, %cst_25 {dimension_numbers = #tpu.dot_dimension_numbers<[1], [0], [0], [1], [0, 0, 1, 1], [], []>} : vector<8x128xf32>, vector<128x128xf32>, vector<8x128xf32> -> vector<8x128xf32>
    %c0_26 = arith.constant 0 : index
    %c0_27 = arith.constant 0 : index
    %50 = vector.load %arg7[%c0_26, %c0_27] : memref<1x128xf32, #tpu.memory_space<vmem>>, vector<1x128xf32>
    %51 = vector.broadcast %50 : vector<1x128xf32> to vector<8x128xf32>
    %52 = arith.addf %49, %51 : vector<8x128xf32>
    %c0_28 = arith.constant 0 : index
    %c0_29 = arith.constant 0 : index
    %53 = vector.load %arg8[%c0_28, %c0_29] : memref<1x128xf32, #tpu.memory_space<vmem>>, vector<1x128xf32>
    %c0_30 = arith.constant 0 : index
    %c0_31 = arith.constant 0 : index
    %54 = vector.load %arg9[%c0_30, %c0_31] : memref<1x128xf32, #tpu.memory_space<vmem>>, vector<1x128xf32>
    %cst_32 = arith.constant dense<0.000000e+00> : vector<8xf32>
    %55 = vector.multi_reduction <add>, %52, %cst_32 [1] : vector<8x128xf32> to vector<8xf32>
    %56 = vector.shape_cast %55 : vector<8xf32> to vector<8x1xf32>
    %cst_33 = arith.constant 1.562500e-02 : f32
    %57 = vector.broadcast %cst_33 : f32 to vector<8x1xf32>
    %58 = arith.mulf %56, %57 : vector<8x1xf32>
    %59 = vector.broadcast %58 : vector<8x1xf32> to vector<8x128xf32>
    %60 = arith.subf %52, %59 : vector<8x128xf32>
    %cst_34 = arith.constant 0.000000e+00 : f32
    %61 = vector.shape_cast %2 : vector<1x128xi1> to vector<1x128xi1>
    %62 = vector.broadcast %61 : vector<1x128xi1> to vector<8x128xi1>
    %63 = vector.broadcast %cst_34 : f32 to vector<8x128xf32>
    %64 = arith.select %62, %60, %63 : vector<8x128xi1>, vector<8x128xf32>
    %65 = arith.mulf %64, %64 : vector<8x128xf32>
    %cst_35 = arith.constant dense<0.000000e+00> : vector<8xf32>
    %66 = vector.multi_reduction <add>, %65, %cst_35 [1] : vector<8x128xf32> to vector<8xf32>
    %67 = vector.shape_cast %66 : vector<8xf32> to vector<8x1xf32>
    %cst_36 = arith.constant 1.562500e-02 : f32
    %68 = vector.broadcast %cst_36 : f32 to vector<8x1xf32>
    %69 = arith.mulf %67, %68 : vector<8x1xf32>
    %cst_37 = arith.constant 9.99999974E-6 : f32
    %70 = vector.broadcast %cst_37 : f32 to vector<8x1xf32>
    %71 = arith.addf %69, %70 : vector<8x1xf32>
    %72 = math.rsqrt %71 : vector<8x1xf32>
    %73 = vector.broadcast %72 : vector<8x1xf32> to vector<8x128xf32>
    %74 = arith.mulf %64, %73 : vector<8x128xf32>
    %75 = vector.broadcast %53 : vector<1x128xf32> to vector<8x128xf32>
    %76 = arith.mulf %74, %75 : vector<8x128xf32>
    %77 = vector.broadcast %54 : vector<1x128xf32> to vector<8x128xf32>
    %78 = arith.addf %76, %77 : vector<8x128xf32>
    %79 = arith.addf %78, %8 : vector<8x128xf32>
    %cst_38 = arith.constant 5.000000e-01 : f32
    %80 = vector.broadcast %cst_38 : f32 to vector<8x128xf32>
    %81 = arith.mulf %80, %79 : vector<8x128xf32>
    %cst_39 = arith.constant 0.707106769 : f32
    %82 = vector.broadcast %cst_39 : f32 to vector<8x128xf32>
    %83 = arith.mulf %79, %82 : vector<8x128xf32>
    %84 = math.erf %83 : vector<8x128xf32>
    %cst_40 = arith.constant 1.000000e+00 : f32
    %85 = vector.broadcast %cst_40 : f32 to vector<8x128xf32>
    %86 = arith.addf %85, %84 : vector<8x128xf32>
    %87 = arith.mulf %81, %86 : vector<8x128xf32>
    %c0_41 = arith.constant 0 : index
    %c0_42 = arith.constant 0 : index
    %88 = vector.load %arg12[%c0_41, %c0_42] : memref<8x128xf32, #tpu.memory_space<vmem>>, vector<8x128xf32>
    tpu.vector_store %arg12[%c0_41, %c0_42], %87 {strides = array<i32>} : memref<8x128xf32, #tpu.memory_space<vmem>>, vector<8x128xf32>,
    return
  }
  func.func @transform_0(%arg0: i32) -> (i32, i32) {
    %c0_i32 = arith.constant 0 : i32
    %c0_i32_0 = arith.constant 0 : i32
    return %arg0, %c0_i32 : i32, i32
  }
  func.func @transform_1(%arg0: i32) -> (i32, i32) {
    %c0_i32 = arith.constant 0 : i32
    %c0_i32_0 = arith.constant 0 : i32
    %c0_i32_1 = arith.constant 0 : i32
    return %c0_i32, %c0_i32_0 : i32, i32
  }
  func.func @transform_2(%arg0: i32) -> (i32, i32) {
    %c0_i32 = arith.constant 0 : i32
    %c0_i32_0 = arith.constant 0 : i32
    %c0_i32_1 = arith.constant 0 : i32
    return %c0_i32, %c0_i32_0 : i32, i32
  }
  func.func @transform_3(%arg0: i32) -> (i32, i32) {
    %c0_i32 = arith.constant 0 : i32
    %c0_i32_0 = arith.constant 0 : i32
    %c0_i32_1 = arith.constant 0 : i32
    return %c0_i32, %c0_i32_0 : i32, i32
  }
  func.func @transform_4(%arg0: i32) -> (i32, i32) {
    %c0_i32 = arith.constant 0 : i32
    %c0_i32_0 = arith.constant 0 : i32
    %c0_i32_1 = arith.constant 0 : i32
    return %c0_i32, %c0_i32_0 : i32, i32
  }
  func.func @transform_5(%arg0: i32) -> (i32, i32) {
    %c0_i32 = arith.constant 0 : i32
    %c0_i32_0 = arith.constant 0 : i32
    %c0_i32_1 = arith.constant 0 : i32
    return %c0_i32, %c0_i32_0 : i32, i32
  }
  func.func @transform_6(%arg0: i32) -> (i32, i32) {
    %c0_i32 = arith.constant 0 : i32
    %c0_i32_0 = arith.constant 0 : i32
    %c0_i32_1 = arith.constant 0 : i32
    return %c0_i32, %c0_i32_0 : i32, i32
  }
  func.func @transform_7(%arg0: i32) -> (i32, i32) {
    %c0_i32 = arith.constant 0 : i32
    %c0_i32_0 = arith.constant 0 : i32
    %c0_i32_1 = arith.constant 0 : i32
    return %c0_i32, %c0_i32_0 : i32, i32
  }
  func.func @transform_8(%arg0: i32) -> (i32, i32) {
    %c0_i32 = arith.constant 0 : i32
    %c0_i32_0 = arith.constant 0 : i32
    %c0_i32_1 = arith.constant 0 : i32
    return %c0_i32, %c0_i32_0 : i32, i32
  }
  func.func @transform_9(%arg0: i32) -> (i32, i32) {
    %c0_i32 = arith.constant 0 : i32
    %c0_i32_0 = arith.constant 0 : i32
    %c0_i32_1 = arith.constant 0 : i32
    return %c0_i32, %c0_i32_0 : i32, i32
  }
  func.func @transform_10(%arg0: i32) -> (i32, i32) {
    %c0_i32 = arith.constant 0 : i32
    %c0_i32_0 = arith.constant 0 : i32
    %c0_i32_1 = arith.constant 0 : i32
    return %c0_i32, %c0_i32_0 : i32, i32
  }
  func.func @transform_11(%arg0: i32) -> (i32, i32) {
    %c0_i32 = arith.constant 0 : i32
    %c0_i32_0 = arith.constant 0 : i32
    return %arg0, %c0_i32 : i32, i32
  }
}

</mosaic_0001>

<bundles_post_ra>
// kernel: tpu_custom_call.1
= control target key start
LH: loop header
LB: loop body
LE: loop exit
PB: predicated region body
PF: predicated region fallthrough
CT: control target
= control target key end

     0   :  { %s1585_s0 = inlined_call_operand.hbm [shape: f32[16,32], index: 0, kind: input, shape index: {}]   ;;  %s1586_s1 = inlined_call_operand.hbm [shape: f32[32,128], index: 1, kind: input, shape index: {}]   ;;  %s1587_s2 = inlined_call_operand.vmem [shape: f32[1,128], index: 2, kind: input, shape index: {}]   ;;  %s1588_s3 = inlined_call_operand.vmem [shape: f32[1,128], index: 3, kind: input, shape index: {}]   ;;  %s1589_s4 = inlined_call_operand.vmem [shape: f32[1,128], index: 4, kind: input, shape index: {}]   ;;  %s1590_s5 = inlined_call_operand.hbm [shape: f32[128,128], index: 5, kind: input, shape index: {}]   ;;  %s1591_s6 = inlined_call_operand.vmem [shape: f32[1,128], index: 6, kind: input, shape index: {}]   ;;  %s1592_s7 = inlined_call_operand.vmem [shape: f32[1,128], index: 7, kind: input, shape index: {}]   ;;  %s1593_s8 = inlined_call_operand.vmem [shape: f32[1,128], index: 8, kind: input, shape index: {}]   ;;  %s1594_s9 = inlined_call_operand.hbm [shape: f32[32,128], index: 9, kind: input, shape index: {}]   ;;  %s1595_s10 = inlined_call_operand.vmem [shape: f32[1,128], index: 10, kind: input, shape index: {}]   ;;  %s1596_s11 = inlined_call_operand.hbm [shape: f32[16,128], index: 11, kind: output, shape index: {}]  }
   0x1   :  { %1604 = sst [smem:[#allocation18_spill]] %s1586_s1 }
   0x2   :  { %1605 = sst [smem:[#allocation19_spill]] %s1590_s5 }
   0x3   :  { %1606 = sst [smem:[#allocation20_spill]] %s1594_s9 }
   0x4   :  { %16 = vsyncpa [#allocation3], 0 }
   0x5   :  { %18 = vsyncpa [#allocation3 + $0x1], 0 }
   0x6   :  { %19 = vsyncpa [#allocation6], 0 }
   0x7   :  { %20 = vsyncpa [#allocation9], 0 }
   0x8   :  { %21 = vsyncpa [#allocation4], 0 }
   0x9   :  { %23 = vsyncpa [#allocation4 + $0x1], 0  ;;  %s1341_s17 = smov 0   ;;  %s1343_s18 = smov 0  }
   0xa   :  { %s1345_s19 = smov 0   ;;  %s1347_s20 = smov 0  }
   0xb LB: > { %1607 = sst [smem:[#allocation15_spill]] %s1266_s19  ;;  %s1362_s21 = sadd.s32 4294967295, %s1270_s20   ;;  %s1270_s20 = sphi %s1347_s20, %s1629_s20   ;;  %s1266_s19 = sphi %s1345_s19, %s1631_s19   ;;  %s1262_s18 = sphi %s1343_s18, %s1633_s18   ;;  %s1258_s17 = sphi %s1341_s17, %s1632_s17  }
   0xc   : > { %s892_s22 = sadd.s32 4294967294, %s1270_s20   ;;  %p49_p0 = scmp.ne.s32.totalorder %s1262_s18, %s1258_s17 }
   0xd   : > { %p1597_p1 = scmp.eq.s32.totalorder %s1362_s21, 0  ;;  %p289_p3 = scmp.eq.s32.totalorder %s892_s22, 1 }
   0xe   : > { %p893_p5 = scmp.ge.s32.totalorder %s1270_s20, 1  ;;  %p296_p7 = scmp.lt.s32.totalorder %s1270_s20, 3 }
   0xf   : > { %p1371_p4 = por %p1597_p1, %p49_p0  ;;  %p1376_p6 = por %p289_p3, %p49_p0 }
  0x10   : > { %p1381_p8 = pnand %p893_p5, %p296_p7  ;;  %s1272_s26 = smov [#allocation5]  }
  0x11   : > { %s1608_s23 = scalar_select %p1371_p4, 1, 0 }
  0x12   : > { %s1609_s24 = scalar_select %p1376_p6, 1, 0 }
  0x13   : > { %s1610_s25 = scalar_select %p1381_p8, 1, 0 }
  0x14   : > { %s308_s27 = sshll.u32 %s1272_s26, 4  ;;  %p1019_p9 = pneg %p1381_p8  ;;  %s309_s27 = int_to_ptr.vmem [resolvable:$true] %s308_s27 }
  0x15   : > { %s1273_s29 = smov [#allocation7]   ;;  %s1274_s12 = smov [#allocation8]  }
  0x16   : > { %p1390_p11 = pnand %p1019_p9, %p1597_p1  ;;  %s330_s30 = sshll.u32 %s1273_s29, 4  ;;  %s331_s30 = int_to_ptr.vmem [resolvable:$true] %s330_s30 }
  0x17   : > { %s352_s13 = sshll.u32 %s1274_s12, 4  ;;  %s1103_s14 = scalar_lea.vmem %s309_s27, 512  ;;  %s353_s13 = int_to_ptr.vmem [resolvable:$true] %s352_s13 }
  0x18   : > { %p1094_p12 = pneg %p1390_p11  ;;  %p1104_p13 = scmp.ne.s32.totalorder %s309_s27, %s1103_s14 }
  0x19   : > { %p1111_p5 = scmp.lt.s32.totalorder %s309_s27, %s309_s27  ;;  %p1112_p7 = scmp.lt.s32.totalorder %s1103_s14, %s1103_s14 }
  0x1a   : > { %p1106_p0 = pnand %p1104_p13, %p1094_p12 }
  0x1b   : > { %p1113_p9 = por %p1112_p7, %p1111_p5 }
  0x1c   : > { %p1107_p3 = pneg %p1106_p0 }
  0x1e   : > { %p1114_p10 = pnand %p1113_p9, %p1107_p3 }
  0x20   : > { %1117 = shalt.err (!%p1114_p10)
}
  0x21   : > { %s1275_s15 = smov 128   ;;  %s1276_s16 = smov 8  }
  0x22   : > { %s1612_s1 = sld [smem:[#allocation18_spill]]  ;;  %s1129_s29 = scalar_lea.vmem %s331_s30, 2048 }
  0x23   : > { %p1130_p1 = scmp.ne.s32.totalorder %s331_s30, %s1129_s29  ;;  %p1137_p2 = scmp.lt.s32.totalorder %s331_s30, %s331_s30 }
  0x24   : > { %p1138_p6 = scmp.lt.s32.totalorder %s1129_s29, %s1129_s29 }
  0x25   : > { %p1132_p13 = pnand %p1130_p1, %p1094_p12 }
  0x26   : > { %p1139_p5 = por %p1138_p6, %p1137_p2 }
  0x27   : > { %p1133_p0 = pneg %p1132_p13 }
  0x28   : > { %1022 = dma.hbm_to_vmem [thread:$0]  (!%p1390_p11), %s1612_s1, 512, %s309_s27, [#allocation6], %s1275_s15, %s1275_s15, %s1276_s16  }
  0x29   : > { %p1140_p3 = pnand %p1139_p5, %p1133_p0 }
  0x2b   : > { %1143 = shalt.err (!%p1140_p3)
}
  0x2c   : > { %s1613_s5 = sld [smem:[#allocation19_spill]]  ;;  %s1155_s27 = scalar_lea.vmem %s353_s13, 512 }
  0x2d   : > { %p1156_p10 = scmp.ne.s32.totalorder %s353_s13, %s1155_s27  ;;  %p1163_p9 = scmp.lt.s32.totalorder %s353_s13, %s353_s13 }
  0x2e   : > { %p1164_p13 = scmp.lt.s32.totalorder %s1155_s27, %s1155_s27 }
  0x2f   : > { %p1158_p7 = pnand %p1156_p10, %p1094_p12 }
  0x30   : > { %p1165_p4 = por %p1164_p13, %p1163_p9 }
  0x31   : > { %p1159_p1 = pneg %p1158_p7 }
  0x32   : > { %1025 = dma.hbm_to_vmem [thread:$0]  (!%p1390_p11), %s1613_s5, 2048, %s331_s30, [#allocation6], %s1275_s15, %s1275_s15, %s1276_s16  }
  0x33   : > { %p1166_p2 = pnand %p1165_p4, %p1159_p1 }
  0x35   : > { %1169 = shalt.err (!%p1166_p2)
}
  0x36   : > { %s1614_s9 = sld [smem:[#allocation20_spill]]  ;;  %s1421_s30 = sadd.s32 1, %s1270_s20  }
  0x37   : > { %1615 = sst [smem:[#allocation16_spill]] %s1421_s30  ;;  %s33_s29 = ssub.s32 %s1270_s20, %s1421_s30 }
  0x38   : > { %s36_s28 = sadd.s32 1, %s1266_s19  ;;  %p34_p4 = scmp.eq.s32.totalorder %s33_s29, 0 }
  0x39   : > { %p43_p6 = scmp.ne.s32.totalorder %s1266_s19, %s1262_s18  ;;  %p44_p12 = scmp.eq.s32.totalorder %s1270_s20, 0 }
  0x3a   : > { %p1040_p0 = scmp.lt.s32.totalorder %s1270_s20, 2  ;;  %p1617_p3 = scmp.eq.s32.totalorder %s1362_s21, 1 }
  0x3b   : > { %s1431_s12 = scalar_select %p34_p4, %s1266_s19, %s36_s28  }
  0x3c   : > { %1028 = dma.hbm_to_vmem [thread:$0]  (!%p1390_p11), %s1614_s9, 512, %s353_s13, [#allocation9], %s1275_s15, %s1275_s15, %s1276_s16  }
  0x3d   : > { %1616 = sst [smem:[#allocation17_spill]] %s1431_s12  ;;  %p45_p5 = por %p44_p12, %p43_p6 }
  0x3e   : > { %p1435_p10 = por %p1617_p3, %p43_p6  ;;  %s369_s27 = sand.u32 1, %s1266_s19  }
  0x3f   : > { %s899_s22 = sshll.u32 %s1270_s20, 7  ;;  %s898_s13 = sshll.u32 %s369_s27, 3 }
  0x40   : > { %s1618_s14 = scalar_select %p1435_p10, 1, 0 }
  0x41   : > { %s1444_s26 = scalar_lea.hbm %s1585_s0, %s899_s22  ;;  %s373_s29 = scalar_lea.vmem [#allocation2], %s898_s13 }
  0x42   : > { %s380_s28 = sshll.u32 %s373_s29, 4  ;;  %p1446_p11 = pnand %p1040_p0, %p45_p5  ;;  %s381_s28 = int_to_ptr.vmem [resolvable:$true] %s380_s28 }
  0x43   : > { %s370_s5 = scalar_lea.sflag [#allocation3], %s369_s27  ;;  %s1170_s9 = scalar_lea.hbm %s1444_s26, 128 }
  0x44   : > { %p1171_p7 = scmp.ne.s32.totalorder %s1444_s26, %s1170_s9  ;;  %p1172_p1 = pneg %p1446_p11 }
  0x45   : > { %s1175_s16 = scalar_lea.hbm %s1585_s0, 256  ;;  %p1176_p2 = scmp.lt.s32.totalorder %s1444_s26, %s1585_s0 }
  0x46   : > { %p1173_p9 = pnand %p1172_p1, %p1171_p7  ;;  %p1177_p4 = scmp.lt.s32.totalorder %s1175_s16, %s1170_s9 }
  0x48   : > { %p1174_p13 = pneg %p1173_p9  ;;  %p1178_p6 = por %p1177_p4, %p1176_p2 }
  0x4a   : > { %p1179_p12 = pnand %p1178_p6, %p1174_p13 }
  0x4c   : > { %1182 = shalt.err (!%p1179_p12)
}
  0x4d   : > { %s1183_s29 = scalar_lea.vmem %s381_s28, 128  ;;  %s1277_s27 = smov [#allocation2]  }
  0x4e   : > { %p1184_p0 = scmp.ne.s32.totalorder %s381_s28, %s1183_s29  ;;  %s1188_s19 = sshll.u32 %s1277_s27, 4  ;;  %s1189_s19 = int_to_ptr.vmem [resolvable:$false] %s1188_s19 }
  0x4f   : > { %s1190_s30 = scalar_lea.vmem %s1189_s19, 256  ;;  %p1191_p7 = scmp.lt.s32.totalorder %s381_s28, %s1189_s19 }
  0x50   : > { %p1186_p5 = pnand %p1184_p0, %p1172_p1  ;;  %p1192_p9 = scmp.lt.s32.totalorder %s1190_s30, %s1183_s29 }
  0x52   : > { %p1187_p3 = pneg %p1186_p5  ;;  %p1193_p10 = por %p1192_p9, %p1191_p7 }
  0x54   : > { %p1194_p8 = pnand %p1193_p10, %p1187_p3 }
  0x56   : > { %1197 = shalt.err (!%p1194_p8)
}
  0x57   : > { %1032 = dma.hbm_to_vmem [thread:$0]  (!%p1446_p11), %s1444_s26, 128, %s381_s28, %s370_s5  }
  0x58   : > { %p1620_p13 = scmp.ne.s32.totalorder %s1610_s25, 0 }
  0x59   : > { %s1467_s9 = sand.u32 (!%p1620_p13), 1, %s1262_s18   ;;  %p1621_p10 = scmp.ne.s32.totalorder (!%p1620_p13), %s1608_s23, 0 }
  0x5a   : > { %389 = sbr.rel (%p1620_p13) target bundleno = 1179 (0x49b), region = 64  ;;  %s901_s12 = sshll.u32 (!%p1620_p13), %s1467_s9, 3 }
  0x5b   : > { %s392_s19 = scalar_lea.sflag (!%p1620_p13), [#allocation3], %s1467_s9  ;;  %s395_s30 = scalar_lea.vmem (!%p1620_p13), [#allocation2], %s901_s12 }
  0x5f   : > { %1241 = dma.done.wait (%p1621_p10), %s392_s19, 128  }
  0x60   : > { %1243 = vsyncadd (%p1621_p10), %s392_s19, 4294967168  ;;  %p1622_p8 = scmp.eq.s32.totalorder %s1362_s21, 0 }
  0x62   : > { %1245 = dma.done.wait (%p1622_p8), [#allocation6], 2560   ;;  %p1623_p11 = pmov %p1622_p8 }
  0x63   : > { %p1624_p1 = pmov %p1622_p8 }
  0x64   : > { %1247 = vsyncadd (%p1623_p11), [#allocation6], 4294964736 }
  0x65   : > { %1249 = dma.done.wait (%p1624_p1), [#allocation9], 512   ;;  %p1625_p2 = pmov %p1624_p1 }
  0x66   : > { %v1278_v0 = vmov 0.0   ;;  %vm1279_vm0 = vmmov 0   ;;  %v453_v1 = vld [vmem:[#allocation8 + $0x18] sm:$0xff]  ;;  %v452_v2 = vld [vmem:[#allocation8 + $0x10] sm:$0xff]  ;;  %v451_v3 = vld [vmem:[#allocation8 + $0x8] sm:$0xff]  ;;  %vm461_vm1 = vcmask 261120   ;;  %v446_v16 = vlaneseq }
  0x67   : > { %1251 = vsyncadd (%p1625_p2), [#allocation9], 4294966784  ;;  %946 = vmatprep.subr.mxu1 %v1278_v0  ;;  %954 = vmatprep.mubr.msk.f32.mxu1 %vm1279_vm0, %v1278_v0  ;;  %v450_v4 = vld [vmem:[#allocation8] sm:$0xff]  ;;  %v449_v5 = vld [vmem:[%s395_s30] sm:$0xff]  ;;  %s916_s1 = sshll.u32 %s1362_s21, 7  ;;  %s445_s5 = scalar_lea.vmem [#allocation10], %s901_s12 }
  0x68   : > { %968 = vmatprep.subr.mxu0 %v1278_v0  ;;  %1000 = vmatprep.mubr.msk.f32.mxu0 %vm1279_vm0, %v1278_v0  ;;  %v538_v6 = vld [vmem:[#allocation5 + $0x18] sm:$0xff]  ;;  %v537_v7 = vld [vmem:[#allocation5 + $0x10] sm:$0xff]  ;;  %v536_v8 = vld [vmem:[#allocation5 + $0x8] sm:$0xff]  ;;  %v1507_v17 = vand.u32 127, %v446_v16  ;;  %s793_s23 = sshll.u32 %s445_s5, 4  ;;  %s791_s28 = scalar_lea.hbm %s1596_s11, %s916_s1  ;;  %s794_s23 = int_to_ptr.vmem [resolvable:$true] %s793_s23 }
  0x69   : > { %947 = vmatpush3.msra.mxu1 %v453_v1  ;;  %v535_v9 = vld [vmem:[#allocation5] sm:$0xff]  ;;  %v908_v12 = vld [vmem:[%s1587_s2] ss:$0 sm:$0xff]  ;;  %v666_v23 = vld [vmem:[#allocation7 + $0x78] sm:$0xff]  ;;  %s780_s22 = scalar_lea.sflag [#allocation4], %s1467_s9  ;;  %s1198_s15 = scalar_lea.vmem %s794_s23, 128 }
  0x6a   : > { %948 = vmatprep.subr.mxu1 %v1278_v0  ;;  %vm448_vm2 = vcmp.lt.s32.totalorder %v1507_v17, 64  ;;  %v665_v24 = vld [vmem:[#allocation7 + $0x70] sm:$0xff]  ;;  %969 = vmatpush3.msra.mxu0 %v666_v23  ;;  %v664_v25 = vld [vmem:[#allocation7 + $0x68] sm:$0xff]  ;;  %v663_v26 = vld [vmem:[#allocation7 + $0x60] sm:$0xff]  ;;  %p1199_p4 = scmp.ne.s32.totalorder %s794_s23, %s1198_s15  ;;  %p1626_p6 = scmp.ne.s32.totalorder %s1618_s14, 0 }
  0x6b   : > { %949 = vmatpush3.msra.mxu1 %v452_v2  ;;  %970 = vmatprep.subr.mxu0 %v1278_v0  ;;  %v662_v27 = vld [vmem:[#allocation7 + $0x58] sm:$0xff]  ;;  %v661_v28 = vld [vmem:[#allocation7 + $0x50] sm:$0xff]  ;;  %v660_v29 = vld [vmem:[#allocation7 + $0x48] sm:$0xff]  ;;  %s1280_s16 = smov [#allocation10]  }
  0x6c   : > { %950 = vmatprep.subr.mxu1 %v1278_v0  ;;  %971 = vmatpush3.msra.mxu0 %v665_v24  ;;  %v659_v30 = vld [vmem:[#allocation7 + $0x40] sm:$0xff]  ;;  %v658_v31 = vld [vmem:[#allocation7 + $0x38] sm:$0xff]  ;;  %v657_v32 = vld [vmem:[#allocation7 + $0x30] sm:$0xff]  ;;  %p1200_p12 = pnand %p1199_p4, %p1626_p6  ;;  %s1202_s21 = sshll.u32 %s1280_s16, 4  ;;  %s1203_s21 = int_to_ptr.vmem [resolvable:$false] %s1202_s21 }
  0x6d   : > { %951 = vmatpush3.msra.mxu1 %v451_v3  ;;  %972 = vmatprep.subr.mxu0 %v1278_v0  ;;  %v656_v33 = vld [vmem:[#allocation7 + $0x28] sm:$0xff]  ;;  %v655_v34 = vld [vmem:[#allocation7 + $0x20] sm:$0xff]  ;;  %v654_v35 = vld [vmem:[#allocation7 + $0x18] sm:$0xff]  ;;  %s1204_s12 = scalar_lea.vmem %s1203_s21, 256  ;;  %p1205_p5 = scmp.lt.s32.totalorder %s794_s23, %s1203_s21 }
  0x6e   : > { %952 = vmatprep.subr.mxu1 %v1278_v0  ;;  %973 = vmatpush3.msra.mxu0 %v664_v25  ;;  %v653_v36 = vld [vmem:[#allocation7 + $0x10] sm:$0xff]  ;;  %v652_v37 = vld [vmem:[#allocation7 + $0x8] sm:$0xff]  ;;  %v651_v38 = vld [vmem:[#allocation7] sm:$0xff]  ;;  %p1201_p0 = pneg %p1200_p12  ;;  %p1206_p3 = scmp.lt.s32.totalorder %s1204_s12, %s1198_s15 }
  0x6f   : > { %953 = vmatpush3.msra.mxu1 %v450_v4  ;;  %974 = vmatprep.subr.mxu0 %v1278_v0  ;;  %v910_v43 = vld [vmem:[%s1588_s3] ss:$0 sm:$0xff] }
  0x70   : > { %955 = vmatmul.mubr.msk.f32.vlgmr.msra.gmra.mxu1 %vm461_vm1, %v449_v5  ;;  %957 = vmatprep.subr.mxu1 %v1278_v0  ;;  %v911_v45 = vld [vmem:[%s1589_s4] ss:$0 sm:$0xff]  ;;  %p1207_p7 = por %p1206_p3, %p1205_p5 }
  0x71   : > { %958 = vmatpush3.msra.mxu1 %v538_v6  ;;  %965 = vmatprep.mubr.msk.f32.mxu1 %vm1279_vm0, %v1278_v0  ;;  %v912_v53 = vld [vmem:[%s1591_s6] ss:$0 sm:$0xff] }
  0x72   : > { %959 = vmatprep.subr.mxu1 %v1278_v0  ;;  %975 = vmatpush3.msra.mxu0 %v663_v26  ;;  %v913_v2 = vld [vmem:[%s1592_s7] ss:$0 sm:$0xff]  ;;  %p1208_p9 = pnand %p1207_p7, %p1201_p0 }
  0x73   : > { %960 = vmatpush3.msra.mxu1 %v537_v7  ;;  %976 = vmatprep.subr.mxu0 %v1278_v0  ;;  %v906_v4 = vld [vmem:[%s1595_s10] ss:$0 sm:$0xff] }
  0x74   : > { %961 = vmatprep.subr.mxu1 %v1278_v0  ;;  %977 = vmatpush3.msra.mxu0 %v662_v27 }
  0x75   : > { %962 = vmatpush3.msra.mxu1 %v536_v8  ;;  %978 = vmatprep.subr.mxu0 %v1278_v0 }
  0x76   : > { %963 = vmatprep.subr.mxu1 %v1278_v0  ;;  %979 = vmatpush3.msra.mxu0 %v661_v28 }
  0x77   : > { %964 = vmatpush3.msra.mxu1 %v535_v9  ;;  %980 = vmatprep.subr.mxu0 %v1278_v0 }
  0x78   : > { %966 = vmatmul.mubr.msk.f32.vlgmr.msra.gmra.mxu1 %vm461_vm1, %v449_v5  ;;  %981 = vmatpush3.msra.mxu0 %v660_v29  ;;  %v914_v5 = vld [vmem:[%s1593_s8] ss:$0 sm:$0xff] }
  0x79   : > { %982 = vmatprep.subr.mxu0 %v1278_v0 }
  0x7a   : > { %983 = vmatpush3.msra.mxu0 %v659_v30 }
  0x7b   : > { %984 = vmatprep.subr.mxu0 %v1278_v0 }
  0x7c   : > { %985 = vmatpush3.msra.mxu0 %v658_v31 }
  0x7d   : > { %986 = vmatprep.subr.mxu0 %v1278_v0 }
  0x7e   : > { %987 = vmatpush3.msra.mxu0 %v657_v32 }
  0x7f   : > { %988 = vmatprep.subr.mxu0 %v1278_v0 }
  0x80   : > { %989 = vmatpush3.msra.mxu0 %v656_v33 }
  0x81   : > { %990 = vmatprep.subr.mxu0 %v1278_v0 }
  0x82   : > { %991 = vmatpush3.msra.mxu0 %v655_v34 }
  0x83   : > { %992 = vmatprep.subr.mxu0 %v1278_v0 }
  0x84   : > { %993 = vmatpush3.msra.mxu0 %v654_v35 }
  0x85   : > { %994 = vmatprep.subr.mxu0 %v1278_v0 }
  0x86   : > { %995 = vmatpush3.msra.mxu0 %v653_v36 }
  0x87   : > { %996 = vmatprep.subr.mxu0 %v1278_v0 }
  0x88   : > { %997 = vmatpush3.msra.mxu0 %v652_v37 }
  0x89   : > { %998 = vmatprep.subr.mxu0 %v1278_v0 }
  0x8a   : > { %999 = vmatpush3.msra.mxu0 %v651_v38 }
 0x130   : > { %v1502_v10 = vpop.f32.mrf.mxu1 }
 0x131   : > { %v532_v7 = vadd.f32 %v906_v4, %v1502_v10 }
 0x132   : > { %v956_v11 = vpop.f32.mrf.mxu1 }
 0x138   : > { %v612_v13 = vpop.f32.mrf.mxu1 }
 0x139   : > { %v613_v14 = vadd.f32 %v908_v12, %v612_v13 }
 0x13a   : > { %v967_v15 = vpop.f32.mrf.mxu1 }
 0x13b   : > { %618 = vadd.xlane.f32.xlu0 %v613_v14 }
 0x1c4   : > { %v619_v18 = vpop.xlane.xlu0 %618 }
 0x1c5   : > { %v620_v19 = vmul.f32 0.015625, %v619_v18 }
 0x1c7   : > { %v621_v20 = vsub.f32 %v613_v14, %v620_v19 }
 0x1c9   : > { %v624_v21 = vsel %vm448_vm2, %v621_v20, 0.0 }
 0x1ca   : > { %v625_v22 = vmul.f32 %v624_v21, %v624_v21 }
 0x1cc   : > { %626 = vadd.xlane.f32.xlu0 %v625_v22 }
 0x255   : > { %v627_v39 = vpop.xlane.xlu0 %626 }
 0x256   : > { %v628_v40 = vmul.f32 0.015625, %v627_v39 }
 0x258   : > { %v629_v41 = vadd.f32 1e-05, %v628_v40 }
 0x25a   : > { %1084 = vrsqrt.f32 %v629_v41 }
 0x267   : > { %v1085_v42 = vpop.eup %1084 }
 0x268   : > { %v631_v44 = vmul.f32 %v1085_v42, %v624_v21 }
 0x26a   : > { %v638_v46 = vmul.f32 %v910_v43, %v631_v44 }
 0x26c   : > { %v645_v47 = vadd.f32 %v911_v45, %v638_v46 }
 0x26e   : > { %v647_v48 = vmul.f32 0.70710677, %v645_v47  ;;  %v646_v50 = vmul.f32 0.5, %v645_v47 }
 0x270   : > { %1086 = verf.f32 %v647_v48 }
 0x27d   : > { %v1087_v49 = vpop.eup %1086 }
 0x27e   : > { %v649_v51 = vadd.f32 1.0, %v1087_v49 }
 0x280   : > { %v650_v52 = vmul.f32 %v649_v51, %v646_v50 }
 0x282   : > { %1001 = vmatmul.mubr.f32.vlgmr.msra.gmra.mxu0 %v650_v52 }
 0x342   : > { %v740_v54 = vpop.f32.mrf.mxu0 }
 0x343   : > { %v741_v55 = vadd.f32 %v912_v53, %v740_v54 }
 0x344   : > { %v1002_v56 = vpop.f32.mrf.mxu0 }
 0x345   : > { %746 = vadd.xlane.f32.xlu1 %v741_v55 }
 0x3ce   : > { %v747_v57 = vpop.xlane.xlu1 %746 }
 0x3cf   : > { %v748_v58 = vmul.f32 0.015625, %v747_v57 }
 0x3d1   : > { %v749_v59 = vsub.f32 %v741_v55, %v748_v58 }
 0x3d3   : > { %v750_v60 = vsel %vm448_vm2, %v749_v59, 0.0 }
 0x3d4   : > { %v751_v61 = vmul.f32 %v750_v60, %v750_v60 }
 0x3d6   : > { %752 = vadd.xlane.f32.xlu1 %v751_v61 }
 0x45f   : > { %v753_v62 = vpop.xlane.xlu1 %752 }
 0x460   : > { %v754_v63 = vmul.f32 0.015625, %v753_v62 }
 0x462   : > { %v755_v0 = vadd.f32 1e-05, %v754_v63 }
 0x464   : > { %1088 = vrsqrt.f32 %v755_v0 }
 0x471   : > { %v1089_v1 = vpop.eup %1088 }
 0x472   : > { %v757_v3 = vmul.f32 %v1089_v1, %v750_v60 }
 0x474   : > { %v764_v6 = vmul.f32 %v913_v2, %v757_v3 }
 0x476   : > { %v771_v8 = vadd.f32 %v914_v5, %v764_v6 }
 0x478   : > { %v772_v9 = vadd.f32 %v771_v8, %v532_v7 }
 0x47a   : > { %v774_v11 = vmul.f32 0.70710677, %v772_v9  ;;  %v773_v13 = vmul.f32 0.5, %v772_v9 }
 0x47c   : > { %1090 = verf.f32 %v774_v11 }
 0x489   : > { %v1091_v12 = vpop.eup %1090 }
 0x48a   : > { %v776_v14 = vadd.f32 1.0, %v1091_v12 }
 0x48c   : > { %v777_v15 = vmul.f32 %v776_v14, %v773_v13 }
 0x48e   : > { %778 = vst [vmem:[%s445_s5] sm:$0xff] %v777_v15 }
 0x48f   : > { %1211 = shalt.err (!%p1208_p9)
}
 0x490   : > { %s1212_s13 = scalar_lea.hbm %s791_s28, 128  ;;  %s1216_s27 = scalar_lea.hbm %s1596_s11, 256 }
 0x491   : > { %p1213_p13 = scmp.ne.s32.totalorder %s791_s28, %s1212_s13  ;;  %p1217_p11 = scmp.lt.s32.totalorder %s791_s28, %s1596_s11 }
 0x492   : > { %p1218_p1 = scmp.lt.s32.totalorder %s1216_s27, %s1212_s13 }
 0x493   : > { %p1214_p10 = pnand %p1213_p13, %p1626_p6 }
 0x494   : > { %p1219_p2 = por %p1218_p1, %p1217_p11 }
 0x495   : > { %p1215_p8 = pneg %p1214_p10 }
 0x497   : > { %p1220_p4 = pnand %p1219_p2, %p1215_p8 }
 0x499   : > { %1223 = shalt.err (!%p1220_p4)
}
 0x49a   : > { %1017 = dma.vmem_to_hbm [thread:$0]  (%p1626_p6), %s794_s23, 128, %s791_s28, %s780_s22  }
 0x49b PF: > { %s805_s1 = sand.u32 1, %s1258_s17   ;;  %p1627_p12 = scmp.ne.s32.totalorder %s1609_s24, 0 }
 0x49c   : > { %p1628_p0 = scmp.ge.s32.totalorder %s1270_s20, 2  ;;  %s806_s5 = scalar_lea.sflag [#allocation4], %s805_s1 }
 0x49e   : > { %p1034_p5 = pnand %p1628_p0, %p1627_p12 }
 0x4a0   : > { %p1035_p3 = pneg %p1034_p5 }
 0x4a2   : > { %1253 = dma.done.wait (%p1035_p3), %s806_s5, 128  }
 0x4a3   : > { %1255 = vsyncadd (%p1035_p3), %s806_s5, 4294967168  ;;  %s1629_s20 = sld [smem:[#allocation16_spill]]  ;;  %s1632_s17 = smov %s1262_s18 }
 0x4a4   : > { %s1630_s25 = sld [smem:[#allocation15_spill]] }
 0x4a5   : > { %s1631_s19 = sld [smem:[#allocation17_spill]] }
 0x4a9   : > { %p26_p7 = scmp.ge.s32.totalorder %s1629_s20, 4  }
 0x4aa   : > { %s1633_s18 = smov %s1630_s25 }
 0x4ab   :  { %28 = sbr.rel (!%p26_p7) target bundleno = 11 (0xb), region = 121 }
 0x4b0   :  { %811 = vsyncpa [#allocation3], 1 }
 0x4b1   :  { %813 = vsyncpa [#allocation3 + $0x1], 1 }
 0x4b2   :  { %814 = vsyncpa [#allocation6], 1 }
 0x4b3   :  { %815 = vsyncpa [#allocation9], 1 }
 0x4b4   :  { %816 = vsyncpa [#allocation4], 1 }
 0x4b5   :  { %818 = vsyncpa [#allocation4 + $0x1], 1 }

// kernel: tpu_custom_call.1
= control target key start
LH: loop header
LB: loop body
LE: loop exit
PB: predicated region body
PF: predicated region fallthrough
CT: control target
= control target key end

     0   :  { %s1585_s0 = inlined_call_operand.hbm [shape: f32[16,32], index: 0, kind: input, shape index: {}]   ;;  %s1586_s1 = inlined_call_operand.hbm [shape: f32[32,128], index: 1, kind: input, shape index: {}]   ;;  %s1587_s2 = inlined_call_operand.vmem [shape: f32[1,128], index: 2, kind: input, shape index: {}]   ;;  %s1588_s3 = inlined_call_operand.vmem [shape: f32[1,128], index: 3, kind: input, shape index: {}]   ;;  %s1589_s4 = inlined_call_operand.vmem [shape: f32[1,128], index: 4, kind: input, shape index: {}]   ;;  %s1590_s5 = inlined_call_operand.hbm [shape: f32[128,128], index: 5, kind: input, shape index: {}]   ;;  %s1591_s6 = inlined_call_operand.vmem [shape: f32[1,128], index: 6, kind: input, shape index: {}]   ;;  %s1592_s7 = inlined_call_operand.vmem [shape: f32[1,128], index: 7, kind: input, shape index: {}]   ;;  %s1593_s8 = inlined_call_operand.vmem [shape: f32[1,128], index: 8, kind: input, shape index: {}]   ;;  %s1594_s9 = inlined_call_operand.hbm [shape: f32[32,128], index: 9, kind: input, shape index: {}]   ;;  %s1595_s10 = inlined_call_operand.vmem [shape: f32[1,128], index: 10, kind: input, shape index: {}]   ;;  %s1596_s11 = inlined_call_operand.hbm [shape: f32[16,128], index: 11, kind: output, shape index: {}]  }
   0x1   :  { %1604 = sst [smem:[#allocation18_spill]] %s1586_s1 }
   0x2   :  { %1605 = sst [smem:[#allocation19_spill]] %s1590_s5 }
   0x3   :  { %1606 = sst [smem:[#allocation20_spill]] %s1594_s9 }
   0x4   :  { %16 = vsyncpa [#allocation3], 0 }
   0x5   :  { %18 = vsyncpa [#allocation3 + $0x1], 0 }
   0x6   :  { %19 = vsyncpa [#allocation6], 0 }
   0x7   :  { %20 = vsyncpa [#allocation9], 0 }
   0x8   :  { %21 = vsyncpa [#allocation4], 0 }
   0x9   :  { %23 = vsyncpa [#allocation4 + $0x1], 0  ;;  %s1341_s17 = smov 0   ;;  %s1343_s18 = smov 0  }
   0xa   :  { %s1345_s19 = smov 0   ;;  %s1347_s20 = smov 0  }
   0xb LB: > { %1607 = sst [smem:[#allocation15_spill]] %s1266_s19  ;;  %s1362_s21 = sadd.s32 4294967295, %s1270_s20   ;;  %s1270_s20 = sphi %s1347_s20, %s1629_s20   ;;  %s1266_s19 = sphi %s1345_s19, %s1631_s19   ;;  %s1262_s18 = sphi %s1343_s18, %s1633_s18   ;;  %s1258_s17 = sphi %s1341_s17, %s1632_s17  }
   0xc   : > { %s892_s22 = sadd.s32 4294967294, %s1270_s20   ;;  %p49_p0 = scmp.ne.s32.totalorder %s1262_s18, %s1258_s17 }
   0xd   : > { %p1597_p1 = scmp.eq.s32.totalorder %s1362_s21, 0  ;;  %p289_p3 = scmp.eq.s32.totalorder %s892_s22, 1 }
   0xe   : > { %p893_p5 = scmp.ge.s32.totalorder %s1270_s20, 1  ;;  %p296_p7 = scmp.lt.s32.totalorder %s1270_s20, 3 }
   0xf   : > { %p1371_p4 = por %p1597_p1, %p49_p0  ;;  %p1376_p6 = por %p289_p3, %p49_p0 }
  0x10   : > { %p1381_p8 = pnand %p893_p5, %p296_p7  ;;  %s1272_s26 = smov [#allocation5]  }
  0x11   : > { %s1608_s23 = scalar_select %p1371_p4, 1, 0 }
  0x12   : > { %s1609_s24 = scalar_select %p1376_p6, 1, 0 }
  0x13   : > { %s1610_s25 = scalar_select %p1381_p8, 1, 0 }
  0x14   : > { %s308_s27 = sshll.u32 %s1272_s26, 4  ;;  %p1019_p9 = pneg %p1381_p8  ;;  %s309_s27 = int_to_ptr.vmem [resolvable:$true] %s308_s27 }
  0x15   : > { %s1273_s29 = smov [#allocation7]   ;;  %s1274_s12 = smov [#allocation8]  }
  0x16   : > { %p1390_p11 = pnand %p1019_p9, %p1597_p1  ;;  %s330_s30 = sshll.u32 %s1273_s29, 4  ;;  %s331_s30 = int_to_ptr.vmem [resolvable:$true] %s330_s30 }
  0x17   : > { %s352_s13 = sshll.u32 %s1274_s12, 4  ;;  %s1103_s14 = scalar_lea.vmem %s309_s27, 512  ;;  %s353_s13 = int_to_ptr.vmem [resolvable:$true] %s352_s13 }
  0x18   : > { %p1094_p12 = pneg %p1390_p11  ;;  %p1104_p13 = scmp.ne.s32.totalorder %s309_s27, %s1103_s14 }
  0x19   : > { %p1111_p5 = scmp.lt.s32.totalorder %s309_s27, %s309_s27  ;;  %p1112_p7 = scmp.lt.s32.totalorder %s1103_s14, %s1103_s14 }
  0x1a   : > { %p1106_p0 = pnand %p1104_p13, %p1094_p12 }
  0x1b   : > { %p1113_p9 = por %p1112_p7, %p1111_p5 }
  0x1c   : > { %p1107_p3 = pneg %p1106_p0 }
  0x1e   : > { %p1114_p10 = pnand %p1113_p9, %p1107_p3 }
  0x20   : > { %1117 = shalt.err (!%p1114_p10)
}
  0x21   : > { %s1275_s15 = smov 128   ;;  %s1276_s16 = smov 8  }
  0x22   : > { %s1612_s1 = sld [smem:[#allocation18_spill]]  ;;  %s1129_s29 = scalar_lea.vmem %s331_s30, 2048 }
  0x23   : > { %p1130_p1 = scmp.ne.s32.totalorder %s331_s30, %s1129_s29  ;;  %p1137_p2 = scmp.lt.s32.totalorder %s331_s30, %s331_s30 }
  0x24   : > { %p1138_p6 = scmp.lt.s32.totalorder %s1129_s29, %s1129_s29 }
  0x25   : > { %p1132_p13 = pnand %p1130_p1, %p1094_p12 }
  0x26   : > { %p1139_p5 = por %p1138_p6, %p1137_p2 }
  0x27   : > { %p1133_p0 = pneg %p1132_p13 }
  0x28   : > { %1022 = dma.hbm_to_vmem [thread:$0]  (!%p1390_p11), %s1612_s1, 512, %s309_s27, [#allocation6], %s1275_s15, %s1275_s15, %s1276_s16  }
  0x29   : > { %p1140_p3 = pnand %p1139_p5, %p1133_p0 }
  0x2b   : > { %1143 = shalt.err (!%p1140_p3)
}
  0x2c   : > { %s1613_s5 = sld [smem:[#allocation19_spill]]  ;;  %s1155_s27 = scalar_lea.vmem %s353_s13, 512 }
  0x2d   : > { %p1156_p10 = scmp.ne.s32.totalorder %s353_s13, %s1155_s27  ;;  %p1163_p9 = scmp.lt.s32.totalorder %s353_s13, %s353_s13 }
  0x2e   : > { %p1164_p13 = scmp.lt.s32.totalorder %s1155_s27, %s1155_s27 }
  0x2f   : > { %p1158_p7 = pnand %p1156_p10, %p1094_p12 }
  0x30   : > { %p1165_p4 = por %p1164_p13, %p1163_p9 }
  0x31   : > { %p1159_p1 = pneg %p1158_p7 }
  0x32   : > { %1025 = dma.hbm_to_vmem [thread:$0]  (!%p1390_p11), %s1613_s5, 2048, %s331_s30, [#allocation6], %s1275_s15, %s1275_s15, %s1276_s16  }
  0x33   : > { %p1166_p2 = pnand %p1165_p4, %p1159_p1 }
  0x35   : > { %1169 = shalt.err (!%p1166_p2)
}
  0x36   : > { %s1614_s9 = sld [smem:[#allocation20_spill]]  ;;  %s1421_s30 = sadd.s32 1, %s1270_s20  }
  0x37   : > { %1615 = sst [smem:[#allocation16_spill]] %s1421_s30  ;;  %s33_s29 = ssub.s32 %s1270_s20, %s1421_s30 }
  0x38   : > { %s36_s28 = sadd.s32 1, %s1266_s19  ;;  %p34_p4 = scmp.eq.s32.totalorder %s33_s29, 0 }
  0x39   : > { %p43_p6 = scmp.ne.s32.totalorder %s1266_s19, %s1262_s18  ;;  %p44_p12 = scmp.eq.s32.totalorder %s1270_s20, 0 }
  0x3a   : > { %p1040_p0 = scmp.lt.s32.totalorder %s1270_s20, 2  ;;  %p1617_p3 = scmp.eq.s32.totalorder %s1362_s21, 1 }
  0x3b   : > { %s1431_s12 = scalar_select %p34_p4, %s1266_s19, %s36_s28  }
  0x3c   : > { %1028 = dma.hbm_to_vmem [thread:$0]  (!%p1390_p11), %s1614_s9, 512, %s353_s13, [#allocation9], %s1275_s15, %s1275_s15, %s1276_s16  }
  0x3d   : > { %1616 = sst [smem:[#allocation17_spill]] %s1431_s12  ;;  %p45_p5 = por %p44_p12, %p43_p6 }
  0x3e   : > { %p1435_p10 = por %p1617_p3, %p43_p6  ;;  %s369_s27 = sand.u32 1, %s1266_s19  }
  0x3f   : > { %s899_s22 = sshll.u32 %s1270_s20, 7  ;;  %s898_s13 = sshll.u32 %s369_s27, 3 }
  0x40   : > { %s1618_s14 = scalar_select %p1435_p10, 1, 0 }
  0x41   : > { %s1444_s26 = scalar_lea.hbm %s1585_s0, %s899_s22  ;;  %s373_s29 = scalar_lea.vmem [#allocation2], %s898_s13 }
  0x42   : > { %s380_s28 = sshll.u32 %s373_s29, 4  ;;  %p1446_p11 = pnand %p1040_p0, %p45_p5  ;;  %s381_s28 = int_to_ptr.vmem [resolvable:$true] %s380_s28 }
  0x43   : > { %s370_s5 = scalar_lea.sflag [#allocation3], %s369_s27  ;;  %s1170_s9 = scalar_lea.hbm %s1444_s26, 128 }
  0x44   : > { %p1171_p7 = scmp.ne.s32.totalorder %s1444_s26, %s1170_s9  ;;  %p1172_p1 = pneg %p1446_p11 }
  0x45   : > { %s1175_s16 = scalar_lea.hbm %s1585_s0, 256  ;;  %p1176_p2 = scmp.lt.s32.totalorder %s1444_s26, %s1585_s0 }
  0x46   : > { %p1173_p9 = pnand %p1172_p1, %p1171_p7  ;;  %p1177_p4 = scmp.lt.s32.totalorder %s1175_s16, %s1170_s9 }
  0x48   : > { %p1174_p13 = pneg %p1173_p9  ;;  %p1178_p6 = por %p1177_p4, %p1176_p2 }
  0x4a   : > { %p1179_p12 = pnand %p1178_p6, %p1174_p13 }
  0x4c   : > { %1182 = shalt.err (!%p1179_p12)
}
  0x4d   : > { %s1183_s29 = scalar_lea.vmem %s381_s28, 128  ;;  %s1277_s27 = smov [#allocation2]  }
  0x4e   : > { %p1184_p0 = scmp.ne.s32.totalorder %s381_s28, %s1183_s29  ;;  %s1188_s19 = sshll.u32 %s1277_s27, 4  ;;  %s1189_s19 = int_to_ptr.vmem [resolvable:$false] %s1188_s19 }
  0x4f   : > { %s1190_s30 = scalar_lea.vmem %s1189_s19, 256  ;;  %p1191_p7 = scmp.lt.s32.totalorder %s381_s28, %s1189_s19 }
  0x50   : > { %p1186_p5 = pnand %p1184_p0, %p1172_p1  ;;  %p1192_p9 = scmp.lt.s32.totalorder %s1190_s30, %s1183_s29 }
  0x52   : > { %p1187_p3 = pneg %p1186_p5  ;;  %p1193_p10 = por %p1192_p9, %p1191_p7 }
  0x54   : > { %p1194_p8 = pnand %p1193_p10, %p1187_p3 }
  0x56   : > { %1197 = shalt.err (!%p1194_p8)
}
  0x57   : > { %1032 = dma.hbm_to_vmem [thread:$0]  (!%p1446_p11), %s1444_s26, 128, %s381_s28, %s370_s5  }
  0x58   : > { %p1620_p13 = scmp.ne.s32.totalorder %s1610_s25, 0 }
  0x59   : > { %s1467_s9 = sand.u32 (!%p1620_p13), 1, %s1262_s18   ;;  %p1621_p10 = scmp.ne.s32.totalorder (!%p1620_p13), %s1608_s23, 0 }
  0x5a   : > { %389 = sbr.rel (%p1620_p13) target bundleno = 1179 (0x49b), region = 64  ;;  %s901_s12 = sshll.u32 (!%p1620_p13), %s1467_s9, 3 }
  0x5b   : > { %s392_s19 = scalar_lea.sflag (!%p1620_p13), [#allocation3], %s1467_s9  ;;  %s395_s30 = scalar_lea.vmem (!%p1620_p13), [#allocation2], %s901_s12 }
  0x5f   : > { %1241 = dma.done.wait (%p1621_p10), %s392_s19, 128  }
  0x60   : > { %1243 = vsyncadd (%p1621_p10), %s392_s19, 4294967168  ;;  %p1622_p8 = scmp.eq.s32.totalorder %s1362_s21, 0 }
  0x62   : > { %1245 = dma.done.wait (%p1622_p8), [#allocation6], 2560   ;;  %p1623_p11 = pmov %p1622_p8 }
  0x63   : > { %p1624_p1 = pmov %p1622_p8 }
  0x64   : > { %1247 = vsyncadd (%p1623_p11), [#allocation6], 4294964736 }
  0x65   : > { %1249 = dma.done.wait (%p1624_p1), [#allocation9], 512   ;;  %p1625_p2 = pmov %p1624_p1 }
  0x66   : > { %v1278_v0 = vmov 0.0   ;;  %vm1279_vm0 = vmmov 0   ;;  %v453_v1 = vld [vmem:[#allocation8 + $0x18] sm:$0xff]  ;;  %v452_v2 = vld [vmem:[#allocation8 + $0x10] sm:$0xff]  ;;  %v451_v3 = vld [vmem:[#allocation8 + $0x8] sm:$0xff]  ;;  %vm461_vm1 = vcmask 261120   ;;  %v446_v16 = vlaneseq }
  0x67   : > { %1251 = vsyncadd (%p1625_p2), [#allocation9], 4294966784  ;;  %946 = vmatprep.subr.mxu1 %v1278_v0  ;;  %954 = vmatprep.mubr.msk.f32.mxu1 %vm1279_vm0, %v1278_v0  ;;  %v450_v4 = vld [vmem:[#allocation8] sm:$0xff]  ;;  %v449_v5 = vld [vmem:[%s395_s30] sm:$0xff]  ;;  %s916_s1 = sshll.u32 %s1362_s21, 7  ;;  %s445_s5 = scalar_lea.vmem [#allocation10], %s901_s12 }
  0x68   : > { %968 = vmatprep.subr.mxu0 %v1278_v0  ;;  %1000 = vmatprep.mubr.msk.f32.mxu0 %vm1279_vm0, %v1278_v0  ;;  %v538_v6 = vld [vmem:[#allocation5 + $0x18] sm:$0xff]  ;;  %v537_v7 = vld [vmem:[#allocation5 + $0x10] sm:$0xff]  ;;  %v536_v8 = vld [vmem:[#allocation5 + $0x8] sm:$0xff]  ;;  %v1507_v17 = vand.u32 127, %v446_v16  ;;  %s793_s23 = sshll.u32 %s445_s5, 4  ;;  %s791_s28 = scalar_lea.hbm %s1596_s11, %s916_s1  ;;  %s794_s23 = int_to_ptr.vmem [resolvable:$true] %s793_s23 }
  0x69   : > { %947 = vmatpush3.msra.mxu1 %v453_v1  ;;  %v535_v9 = vld [vmem:[#allocation5] sm:$0xff]  ;;  %v908_v12 = vld [vmem:[%s1587_s2] ss:$0 sm:$0xff]  ;;  %v666_v23 = vld [vmem:[#allocation7 + $0x78] sm:$0xff]  ;;  %s780_s22 = scalar_lea.sflag [#allocation4], %s1467_s9  ;;  %s1198_s15 = scalar_lea.vmem %s794_s23, 128 }
  0x6a   : > { %948 = vmatprep.subr.mxu1 %v1278_v0  ;;  %vm448_vm2 = vcmp.lt.s32.totalorder %v1507_v17, 64  ;;  %v665_v24 = vld [vmem:[#allocation7 + $0x70] sm:$0xff]  ;;  %969 = vmatpush3.msra.mxu0 %v666_v23  ;;  %v664_v25 = vld [vmem:[#allocation7 + $0x68] sm:$0xff]  ;;  %v663_v26 = vld [vmem:[#allocation7 + $0x60] sm:$0xff]  ;;  %p1199_p4 = scmp.ne.s32.totalorder %s794_s23, %s1198_s15  ;;  %p1626_p6 = scmp.ne.s32.totalorder %s1618_s14, 0 }
  0x6b   : > { %949 = vmatpush3.msra.mxu1 %v452_v2  ;;  %970 = vmatprep.subr.mxu0 %v1278_v0  ;;  %v662_v27 = vld [vmem:[#allocation7 + $0x58] sm:$0xff]  ;;  %v661_v28 = vld [vmem:[#allocation7 + $0x50] sm:$0xff]  ;;  %v660_v29 = vld [vmem:[#allocation7 + $0x48] sm:$0xff]  ;;  %s1280_s16 = smov [#allocation10]  }
  0x6c   : > { %950 = vmatprep.subr.mxu1 %v1278_v0  ;;  %971 = vmatpush3.msra.mxu0 %v665_v24  ;;  %v659_v30 = vld [vmem:[#allocation7 + $0x40] sm:$0xff]  ;;  %v658_v31 = vld [vmem:[#allocation7 + $0x38] sm:$0xff]  ;;  %v657_v32 = vld [vmem:[#allocation7 + $0x30] sm:$0xff]  ;;  %p1200_p12 = pnand %p1199_p4, %p1626_p6  ;;  %s1202_s21 = sshll.u32 %s1280_s16, 4  ;;  %s1203_s21 = int_to_ptr.vmem [resolvable:$false] %s1202_s21 }
  0x6d   : > { %951 = vmatpush3.msra.mxu1 %v451_v3  ;;  %972 = vmatprep.subr.mxu0 %v1278_v0  ;;  %v656_v33 = vld [vmem:[#allocation7 + $0x28] sm:$0xff]  ;;  %v655_v34 = vld [vmem:[#allocation7 + $0x20] sm:$0xff]  ;;  %v654_v35 = vld [vmem:[#allocation7 + $0x18] sm:$0xff]  ;;  %s1204_s12 = scalar_lea.vmem %s1203_s21, 256  ;;  %p1205_p5 = scmp.lt.s32.totalorder %s794_s23, %s1203_s21 }
  0x6e   : > { %952 = vmatprep.subr.mxu1 %v1278_v0  ;;  %973 = vmatpush3.msra.mxu0 %v664_v25  ;;  %v653_v36 = vld [vmem:[#allocation7 + $0x10] sm:$0xff]  ;;  %v652_v37 = vld [vmem:[#allocation7 + $0x8] sm:$0xff]  ;;  %v651_v38 = vld [vmem:[#allocation7] sm:$0xff]  ;;  %p1201_p0 = pneg %p1200_p12  ;;  %p1206_p3 = scmp.lt.s32.totalorder %s1204_s12, %s1198_s15 }
  0x6f   : > { %953 = vmatpush3.msra.mxu1 %v450_v4  ;;  %974 = vmatprep.subr.mxu0 %v1278_v0  ;;  %v910_v43 = vld [vmem:[%s1588_s3] ss:$0 sm:$0xff] }
  0x70   : > { %955 = vmatmul.mubr.msk.f32.vlgmr.msra.gmra.mxu1 %vm461_vm1, %v449_v5  ;;  %957 = vmatprep.subr.mxu1 %v1278_v0  ;;  %v911_v45 = vld [vmem:[%s1589_s4] ss:$0 sm:$0xff]  ;;  %p1207_p7 = por %p1206_p3, %p1205_p5 }
  0x71   : > { %958 = vmatpush3.msra.mxu1 %v538_v6  ;;  %965 = vmatprep.mubr.msk.f32.mxu1 %vm1279_vm0, %v1278_v0  ;;  %v912_v53 = vld [vmem:[%s1591_s6] ss:$0 sm:$0xff] }
  0x72   : > { %959 = vmatprep.subr.mxu1 %v1278_v0  ;;  %975 = vmatpush3.msra.mxu0 %v663_v26  ;;  %v913_v2 = vld [vmem:[%s1592_s7] ss:$0 sm:$0xff]  ;;  %p1208_p9 = pnand %p1207_p7, %p1201_p0 }
  0x73   : > { %960 = vmatpush3.msra.mxu1 %v537_v7  ;;  %976 = vmatprep.subr.mxu0 %v1278_v0  ;;  %v906_v4 = vld [vmem:[%s1595_s10] ss:$0 sm:$0xff] }
  0x74   : > { %961 = vmatprep.subr.mxu1 %v1278_v0  ;;  %977 = vmatpush3.msra.mxu0 %v662_v27 }
  0x75   : > { %962 = vmatpush3.msra.mxu1 %v536_v8  ;;  %978 = vmatprep.subr.mxu0 %v1278_v0 }
  0x76   : > { %963 = vmatprep.subr.mxu1 %v1278_v0  ;;  %979 = vmatpush3.msra.mxu0 %v661_v28 }
  0x77   : > { %964 = vmatpush3.msra.mxu1 %v535_v9  ;;  %980 = vmatprep.subr.mxu0 %v1278_v0 }
  0x78   : > { %966 = vmatmul.mubr.msk.f32.vlgmr.msra.gmra.mxu1 %vm461_vm1, %v449_v5  ;;  %981 = vmatpush3.msra.mxu0 %v660_v29  ;;  %v914_v5 = vld [vmem:[%s1593_s8] ss:$0 sm:$0xff] }
  0x79   : > { %982 = vmatprep.subr.mxu0 %v1278_v0 }
  0x7a   : > { %983 = vmatpush3.msra.mxu0 %v659_v30 }
  0x7b   : > { %984 = vmatprep.subr.mxu0 %v1278_v0 }
  0x7c   : > { %985 = vmatpush3.msra.mxu0 %v658_v31 }
  0x7d   : > { %986 = vmatprep.subr.mxu0 %v1278_v0 }
  0x7e   : > { %987 = vmatpush3.msra.mxu0 %v657_v32 }
  0x7f   : > { %988 = vmatprep.subr.mxu0 %v1278_v0 }
  0x80   : > { %989 = vmatpush3.msra.mxu0 %v656_v33 }
  0x81   : > { %990 = vmatprep.subr.mxu0 %v1278_v0 }
  0x82   : > { %991 = vmatpush3.msra.mxu0 %v655_v34 }
  0x83   : > { %992 = vmatprep.subr.mxu0 %v1278_v0 }
  0x84   : > { %993 = vmatpush3.msra.mxu0 %v654_v35 }
  0x85   : > { %994 = vmatprep.subr.mxu0 %v1278_v0 }
  0x86   : > { %995 = vmatpush3.msra.mxu0 %v653_v36 }
  0x87   : > { %996 = vmatprep.subr.mxu0 %v1278_v0 }
  0x88   : > { %997 = vmatpush3.msra.mxu0 %v652_v37 }
  0x89   : > { %998 = vmatprep.subr.mxu0 %v1278_v0 }
  0x8a   : > { %999 = vmatpush3.msra.mxu0 %v651_v38 }
 0x130   : > { %v1502_v10 = vpop.f32.mrf.mxu1 }
 0x131   : > { %v532_v7 = vadd.f32 %v906_v4, %v1502_v10 }
 0x132   : > { %v956_v11 = vpop.f32.mrf.mxu1 }
 0x138   : > { %v612_v13 = vpop.f32.mrf.mxu1 }
 0x139   : > { %v613_v14 = vadd.f32 %v908_v12, %v612_v13 }
 0x13a   : > { %v967_v15 = vpop.f32.mrf.mxu1 }
 0x13b   : > { %618 = vadd.xlane.f32.xlu0 %v613_v14 }
 0x1c4   : > { %v619_v18 = vpop.xlane.xlu0 %618 }
 0x1c5   : > { %v620_v19 = vmul.f32 0.015625, %v619_v18 }
 0x1c7   : > { %v621_v20 = vsub.f32 %v613_v14, %v620_v19 }
 0x1c9   : > { %v624_v21 = vsel %vm448_vm2, %v621_v20, 0.0 }
 0x1ca   : > { %v625_v22 = vmul.f32 %v624_v21, %v624_v21 }
 0x1cc   : > { %626 = vadd.xlane.f32.xlu0 %v625_v22 }
 0x255   : > { %v627_v39 = vpop.xlane.xlu0 %626 }
 0x256   : > { %v628_v40 = vmul.f32 0.015625, %v627_v39 }
 0x258   : > { %v629_v41 = vadd.f32 1e-05, %v628_v40 }
 0x25a   : > { %1084 = vrsqrt.f32 %v629_v41 }
 0x267   : > { %v1085_v42 = vpop.eup %1084 }
 0x268   : > { %v631_v44 = vmul.f32 %v1085_v42, %v624_v21 }
 0x26a   : > { %v638_v46 = vmul.f32 %v910_v43, %v631_v44 }
 0x26c   : > { %v645_v47 = vadd.f32 %v911_v45, %v638_v46 }
 0x26e   : > { %v647_v48 = vmul.f32 0.70710677, %v645_v47  ;;  %v646_v50 = vmul.f32 0.5, %v645_v47 }
 0x270   : > { %1086 = verf.f32 %v647_v48 }
 0x27d   : > { %v1087_v49 = vpop.eup %1086 }
 0x27e   : > { %v649_v51 = vadd.f32 1.0, %v1087_v49 }
 0x280   : > { %v650_v52 = vmul.f32 %v649_v51, %v646_v50 }
 0x282   : > { %1001 = vmatmul.mubr.f32.vlgmr.msra.gmra.mxu0 %v650_v52 }
 0x342   : > { %v740_v54 = vpop.f32.mrf.mxu0 }
 0x343   : > { %v741_v55 = vadd.f32 %v912_v53, %v740_v54 }
 0x344   : > { %v1002_v56 = vpop.f32.mrf.mxu0 }
 0x345   : > { %746 = vadd.xlane.f32.xlu1 %v741_v55 }
 0x3ce   : > { %v747_v57 = vpop.xlane.xlu1 %746 }
 0x3cf   : > { %v748_v58 = vmul.f32 0.015625, %v747_v57 }
 0x3d1   : > { %v749_v59 = vsub.f32 %v741_v55, %v748_v58 }
 0x3d3   : > { %v750_v60 = vsel %vm448_vm2, %v749_v59, 0.0 }
 0x3d4   : > { %v751_v61 = vmul.f32 %v750_v60, %v750_v60 }
 0x3d6   : > { %752 = vadd.xlane.f32.xlu1 %v751_v61 }
 0x45f   : > { %v753_v62 = vpop.xlane.xlu1 %752 }
 0x460   : > { %v754_v63 = vmul.f32 0.015625, %v753_v62 }
 0x462   : > { %v755_v0 = vadd.f32 1e-05, %v754_v63 }
 0x464   : > { %1088 = vrsqrt.f32 %v755_v0 }
 0x471   : > { %v1089_v1 = vpop.eup %1088 }
 0x472   : > { %v757_v3 = vmul.f32 %v1089_v1, %v750_v60 }
 0x474   : > { %v764_v6 = vmul.f32 %v913_v2, %v757_v3 }
 0x476   : > { %v771_v8 = vadd.f32 %v914_v5, %v764_v6 }
 0x478   : > { %v772_v9 = vadd.f32 %v771_v8, %v532_v7 }
 0x47a   : > { %v774_v11 = vmul.f32 0.70710677, %v772_v9  ;;  %v773_v13 = vmul.f32 0.5, %v772_v9 }
 0x47c   : > { %1090 = verf.f32 %v774_v11 }
 0x489   : > { %v1091_v12 = vpop.eup %1090 }
 0x48a   : > { %v776_v14 = vadd.f32 1.0, %v1091_v12 }
 0x48c   : > { %v777_v15 = vmul.f32 %v776_v14, %v773_v13 }
 0x48e   : > { %778 = vst [vmem:[%s445_s5] sm:$0xff] %v777_v15 }
 0x48f   : > { %1211 = shalt.err (!%p1208_p9)
}
 0x490   : > { %s1212_s13 = scalar_lea.hbm %s791_s28, 128  ;;  %s1216_s27 = scalar_lea.hbm %s1596_s11, 256 }
 0x491   : > { %p1213_p13 = scmp.ne.s32.totalorder %s791_s28, %s1212_s13  ;;  %p1217_p11 = scmp.lt.s32.totalorder %s791_s28, %s1596_s11 }
 0x492   : > { %p1218_p1 = scmp.lt.s32.totalorder %s1216_s27, %s1212_s13 }
 0x493   : > { %p1214_p10 = pnand %p1213_p13, %p1626_p6 }
 0x494   : > { %p1219_p2 = por %p1218_p1, %p1217_p11 }
 0x495   : > { %p1215_p8 = pneg %p1214_p10 }
 0x497   : > { %p1220_p4 = pnand %p1219_p2, %p1215_p8 }
 0x499   : > { %1223 = shalt.err (!%p1220_p4)
}
 0x49a   : > { %1017 = dma.vmem_to_hbm [thread:$0]  (%p1626_p6), %s794_s23, 128, %s791_s28, %s780_s22  }
 0x49b PF: > { %s805_s1 = sand.u32 1, %s1258_s17   ;;  %p1627_p12 = scmp.ne.s32.totalorder %s1609_s24, 0 }
 0x49c   : > { %p1628_p0 = scmp.ge.s32.totalorder %s1270_s20, 2  ;;  %s806_s5 = scalar_lea.sflag [#allocation4], %s805_s1 }
 0x49e   : > { %p1034_p5 = pnand %p1628_p0, %p1627_p12 }
 0x4a0   : > { %p1035_p3 = pneg %p1034_p5 }
 0x4a2   : > { %1253 = dma.done.wait (%p1035_p3), %s806_s5, 128  }
 0x4a3   : > { %1255 = vsyncadd (%p1035_p3), %s806_s5, 4294967168  ;;  %s1629_s20 = sld [smem:[#allocation16_spill]]  ;;  %s1632_s17 = smov %s1262_s18 }
 0x4a4   : > { %s1630_s25 = sld [smem:[#allocation15_spill]] }
 0x4a5   : > { %s1631_s19 = sld [smem:[#allocation17_spill]] }
 0x4a9   : > { %p26_p7 = scmp.ge.s32.totalorder %s1629_s20, 4  }
 0x4aa   : > { %s1633_s18 = smov %s1630_s25 }
 0x4ab   :  { %28 = sbr.rel (!%p26_p7) target bundleno = 11 (0xb), region = 121 }
 0x4b0   :  { %811 = vsyncpa [#allocation3], 1 }
 0x4b1   :  { %813 = vsyncpa [#allocation3 + $0x1], 1 }
 0x4b2   :  { %814 = vsyncpa [#allocation6], 1 }
 0x4b3   :  { %815 = vsyncpa [#allocation9], 1 }
 0x4b4   :  { %816 = vsyncpa [#allocation4], 1 }
 0x4b5   :  { %818 = vsyncpa [#allocation4 + $0x1], 1 }

</bundles_post_ra>
